<compile_context>
chip_gen: v6e
topology: v6e:2x2x1
jax: 0.10.0
libtpu: 0.0.40
codegen_flags: <defaults>
</compile_context>

<pallas_src>
import functools

import jax
import jax.numpy as jnp
from jax.experimental import pallas as pl
from jax.experimental.pallas import tpu as pltpu


# ----------------------------------------------------------------------------
# In-kernel helpers
# ----------------------------------------------------------------------------
def _layernorm(x, g, b, eps=1e-5):
    # x: (S, D); g/b: (1, D).  Matches nn.LayerNorm (biased variance).
    mu = jnp.mean(x, axis=-1, keepdims=True)
    var = jnp.mean((x - mu) ** 2, axis=-1, keepdims=True)
    return (x - mu) * jax.lax.rsqrt(var + eps) * g + b


# ----------------------------------------------------------------------------
# Fully fused per-layer kernel (grid over batch)
# ----------------------------------------------------------------------------
def _layer_kernel(x_ref, cos_ref, sin_ref,
                  g1_ref, b1_ref, wqkv_ref, wo_ref,
                  g2_ref, b2_ref, wwv_ref, w2_ref,
                  o_ref,
                  qkv_scr, attn_scr,
                  *, n_heads, head_dim, hidden_dim, mxu_dtype):
    S = x_ref.shape[1]
    hd = head_dim
    half = hd // 2
    n = n_heads
    rs = S // n                     # rows of the (S, *) activation per flat-view head
    f32 = jnp.float32

    def mm(a, b):
        return jnp.dot(a.astype(mxu_dtype), b.astype(mxu_dtype),
                       preferred_element_type=f32)

    x = x_ref[0]                    # (S, D)

    # ---- LN1 + fused QKV projection (one MXU matmul) ------------------------
    # wqkv columns are packed host-side per lane-block c as [q1|q2|k1|k2|v]
    # (q/k de-interleaved for rotate-half RoPE, 1/scale folded into q).
    xn = _layernorm(x, g1_ref[...], b1_ref[...])
    qkv = mm(xn, wqkv_ref[...])     # (S, 3*Hd)

    # ---- relayout to the torch flat-.view() head layout ---------------------
    # Head h == rows [h*rs,(h+1)*rs) of the (S, 3Hd) activation re-read with row
    # width 3*hd.  We use the c-major row order (a fixed permutation; undone
    # below).  One store per (h, c) of a full 3*hd-wide block; at lane-aligned
    # production shapes these are unmasked full-width vst.
    # TODO(synk): replace with a single value-level reshape / pltpu.einshape
    #             once unaligned lane-dim reshapes lower robustly at all shapes.
    bw = 3 * hd
    for h in range(n):
        src = qkv[h * rs:(h + 1) * rs, :]                       # (rs, 3Hd)
        for c in range(n):
            qkv_scr[h, c * rs:(c + 1) * rs, :] = src[:, c * bw:(c + 1) * bw]

    t = qkv_scr[...]                                            # (n, S, 3*hd)
    q1 = t[:, :, 0 * half:1 * half]
    q2 = t[:, :, 1 * half:2 * half]
    k1 = t[:, :, 2 * half:3 * half]
    k2 = t[:, :, 3 * half:4 * half]
    v3 = t[:, :, 4 * half:]                                     # (n, S, hd)

    # ---- RoPE: elementwise rotate in half space (no pair-swap matmul) -------
    cosb = cos_ref[...][None]                                   # (1, S, half)
    sinb = sin_ref[...][None]
    q1r = q1 * cosb - q2 * sinb
    q2r = q1 * sinb + q2 * cosb
    k1r = k1 * cosb - k2 * sinb
    k2r = k1 * sinb + k2 * cosb

    # ---- batched attention over all heads (1/scale already in wq) -----------
    def bmm_qk(a, b):
        return jnp.einsum('hqd,hkd->hqk', a.astype(mxu_dtype), b.astype(mxu_dtype),
                          preferred_element_type=f32)

    s = bmm_qk(q1r, k1r) + bmm_qk(q2r, k2r)                     # (n, S, S)
    s = s - jnp.max(s, axis=-1, keepdims=True)
    e = jnp.exp(s)
    den = jnp.sum(e, axis=-1, keepdims=True)
    r = pl.reciprocal(den, approx=True)                         # EUP slot
    r = r * (2.0 - den * r)                                     # 1 Newton step -> ~exact
    p = e * r
    o3 = jnp.einsum('hqk,hkd->hqd', p.astype(mxu_dtype), v3.astype(mxu_dtype),
                    preferred_element_type=f32)                 # (n, S, hd)

    # ---- undo the permutation back to the flat (S, Hd) layout ---------------
    for h in range(n):
        for c in range(n):
            attn_scr[h * rs:(h + 1) * rs, c * hd:(c + 1) * hd] = \
                o3[h, c * rs:(c + 1) * rs, :]

    # ---- Wo: one full-K matmul + residual ------------------------------------
    h1 = x + mm(attn_scr[...], wo_ref[...])                     # (S, D)

    # ---- LN2 + SwiGLU FFN (fused W||V matmul) + residual ---------------------
    hn = _layernorm(h1, g2_ref[...], b2_ref[...])
    wv = mm(hn, wwv_ref[...])                                   # (S, 2H)
    a = wv[:, :hidden_dim]
    g = wv[:, hidden_dim:]
    ff = a * jax.nn.sigmoid(a) * g                              # SiLU(Wx) * (Vx)
    o_ref[0] = (h1 + mm(ff, w2_ref[...])).astype(o_ref.dtype)


def transformer_layer(x, rope_tabs, p, *, n_heads, head_dim, hidden_dim,
                      mxu_dtype=jnp.float32):
    B, S, D = x.shape
    Hd = n_heads * head_dim
    half = head_dim // 2
    assert S % n_heads == 0, "fused kernel requires seq_len % n_heads == 0"
    assert head_dim % 2 == 0
    cos_p, sin_p = rope_tabs
    kernel = functools.partial(_layer_kernel, n_heads=n_heads, head_dim=head_dim,
                               hidden_dim=hidden_dim, mxu_dtype=mxu_dtype)
    return pl.pallas_call(
        kernel,
        out_shape=jax.ShapeDtypeStruct((B, S, D), x.dtype),
        grid=(B,),
        in_specs=[
            pl.BlockSpec((1, S, D), lambda i: (i, 0, 0)),            # x
            pl.BlockSpec((S, half), lambda i: (0, 0)),               # RoPE cos
            pl.BlockSpec((S, half), lambda i: (0, 0)),               # RoPE sin
            pl.BlockSpec((1, D), lambda i: (0, 0)),                  # ln1 gamma
            pl.BlockSpec((1, D), lambda i: (0, 0)),                  # ln1 beta
            pl.BlockSpec((D, 3 * Hd), lambda i: (0, 0)),             # packed Wq||Wk||Wv
            pl.BlockSpec((Hd, D), lambda i: (0, 0)),                 # Wo
            pl.BlockSpec((1, D), lambda i: (0, 0)),                  # ln2 gamma
            pl.BlockSpec((1, D), lambda i: (0, 0)),                  # ln2 beta
            pl.BlockSpec((D, 2 * hidden_dim), lambda i: (0, 0)),     # W||V
            pl.BlockSpec((hidden_dim, D), lambda i: (0, 0)),         # W2
        ],
        out_specs=pl.BlockSpec((1, S, D), lambda i: (i, 0, 0)),
        scratch_shapes=[
            pltpu.VMEM((n_heads, S, 3 * head_dim), jnp.float32),     # head-layout qkv
            pltpu.VMEM((S, Hd), jnp.float32),                        # attention out (flat)
        ],
        compiler_params=pltpu.CompilerParams(
            dimension_semantics=("parallel",),                       # megacore
            vmem_limit_bytes=32 * 1024 * 1024,
        ),
    )(x, cos_p, sin_p,
      p["ln1_g"], p["ln1_b"], p["wqkv"], p["wo"],
      p["ln2_g"], p["ln2_b"], p["wwv"], p["w2"])


# ----------------------------------------------------------------------------
# Host-side constants / parameter packing
# ----------------------------------------------------------------------------
def rope_tables(S, head_dim, n_heads, base=10000.0):
    """cos/sin (S, hd/2) in the kernel's permuted row order + complex table for ref."""
    assert S % n_heads == 0 and head_dim % 2 == 0
    hd = head_dim
    half = hd // 2
    rs = S // n_heads
    freqs = 1.0 / base ** (jnp.arange(0, hd, 2, dtype=jnp.float32) / hd)     # (half,)
    t = jnp.arange(S - 1, dtype=jnp.float32)
    ang = jnp.outer(t, freqs)                                                # (S-1, half)
    cos_v = jnp.concatenate([jnp.ones((1, half), jnp.float32), jnp.cos(ang)], axis=0)
    sin_v = jnp.concatenate([jnp.zeros((1, half), jnp.float32), jnp.sin(ang)], axis=0)
    # permuted row r = c*rs + s'  ->  view position s = s'*n_heads + c
    r = jnp.arange(S)
    view_pos = (r % rs) * n_heads + (r // rs)
    cos_p = cos_v[view_pos]
    sin_p = sin_v[view_pos]
    freqs_cis = jnp.exp(1j * ang.astype(jnp.complex64))      # pure-JAX reference only
    return cos_p, sin_p, freqs_cis


def pack_params(params, n_heads, head_dim, weight_dtype=jnp.float32):
    """Fuse Wq/Wk/Wv (per lane-block, q/k de-interleaved, 1/scale folded) and W||V."""
    hd = head_dim
    scale = hd ** 0.5
    packed = []
    for p in params:
        wq = p["wq"] * (1.0 / scale)
        wk = p["wk"]
        wv = p["wv"]
        blocks = []
        for c in range(n_heads):
            qb = wq[:, c * hd:(c + 1) * hd]
            kb = wk[:, c * hd:(c + 1) * hd]
            vb = wv[:, c * hd:(c + 1) * hd]
            blocks.append(jnp.concatenate(
                [qb[:, 0::2], qb[:, 1::2], kb[:, 0::2], kb[:, 1::2], vb], axis=1))
        packed.append(dict(
            ln1_g=p["ln1_g"], ln1_b=p["ln1_b"],
            wqkv=jnp.concatenate(blocks, axis=1).astype(weight_dtype),
            wo=p["wo"].astype(weight_dtype),
            ln2_g=p["ln2_g"], ln2_b=p["ln2_b"],
            wwv=jnp.concatenate([p["W"], p["V"]], axis=1).astype(weight_dtype),
            w2=p["W2"].astype(weight_dtype),
        ))
    return packed


def transformer_forward(x, packed_params, rope_tabs, n_heads, head_dim, hidden_dim,
                        mxu_dtype=jnp.float32):
    # TODO(synk): cross-layer weight prefetch (P10) for small-batch / v5e runs.
    for p in packed_params:
        x = transformer_layer(x, rope_tabs, p, n_heads=n_heads, head_dim=head_dim,
                              hidden_dim=hidden_dim, mxu_dtype=mxu_dtype)
    # NOTE: PyTorch Transformer.forward never applies self.norm — reproduced exactly.
    return x


# ----------------------------------------------------------------------------
# Pure-JAX reference (mirrors the PyTorch code literally, incl. complex RoPE)
# ----------------------------------------------------------------------------
def _ln_ref(x, g, b, eps=1e-5):
    mu = jnp.mean(x, axis=-1, keepdims=True)
    var = jnp.mean((x - mu) ** 2, axis=-1, keepdims=True)
    return (x - mu) / jnp.sqrt(var + eps) * g[0] + b[0]


def _apply_rope_ref(x, freqs_cis):
    rot = x[:, :, 1:]
    xc = rot.reshape(*rot.shape[:-1], -1, 2)
    xc = xc[..., 0] + 1j * xc[..., 1]
    xc = xc * freqs_cis[: xc.shape[2]]
    out = jnp.stack([jnp.real(xc), jnp.imag(xc)], axis=-1).reshape(rot.shape)
    return jnp.concatenate([x[:, :, :1], out], axis=2)


def reference_forward(x, params, freqs_cis, n_heads, head_dim):
    B, S, D = x.shape
    Hd = n_heads * head_dim
    for p in params:
        xn = _ln_ref(x, p["ln1_g"], p["ln1_b"])
        q = (xn @ p["wq"]).reshape(B, n_heads, S, head_dim)   # flat .view semantics
        k = (xn @ p["wk"]).reshape(B, n_heads, S, head_dim)
        v = (xn @ p["wv"]).reshape(B, n_heads, S, head_dim)
        q = _apply_rope_ref(q, freqs_cis)
        k = _apply_rope_ref(k, freqs_cis)
        w = jnp.einsum("bhqd,bhkd->bhqk", q, k) / (head_dim ** 0.5)
        w = jax.nn.softmax(w, axis=-1)
        o = jnp.einsum("bhqk,bhkd->bhqd", w, v).reshape(B, S, Hd)
        h = x + o @ p["wo"]
        hn = _ln_ref(h, p["ln2_g"], p["ln2_b"])
        x = h + (jax.nn.silu(hn @ p["W"]) * (hn @ p["V"])) @ p["W2"]
    return x


# ----------------------------------------------------------------------------
# Deterministic parameter init
# ----------------------------------------------------------------------------
def init_params(key, num_layers, dim, head_dim, hidden_dim, n_heads):
    Hd = n_heads * head_dim
    params = []
    for _ in range(num_layers):
        key, *ks = jax.random.split(key, 10)
        params.append(dict(
            ln1_g=(1.0 + 0.1 * jax.random.normal(ks[0], (1, dim), jnp.float32)),
            ln1_b=0.1 * jax.random.normal(ks[1], (1, dim), jnp.float32),
            wq=jax.random.normal(ks[2], (dim, Hd), jnp.float32) / dim ** 0.5,
            wk=jax.random.normal(ks[3], (dim, Hd), jnp.float32) / dim ** 0.5,
            wv=jax.random.normal(ks[4], (dim, Hd), jnp.float32) / dim ** 0.5,
            wo=jax.random.normal(ks[5], (Hd, dim), jnp.float32) / Hd ** 0.5,
            ln2_g=(1.0 + 0.1 * jax.random.normal(ks[6], (1, dim), jnp.float32)),
            ln2_b=0.1 * jax.random.normal(ks[7], (1, dim), jnp.float32),
            W=jax.random.normal(ks[8], (dim, hidden_dim), jnp.float32) / dim ** 0.5,
            V=jax.random.normal(jax.random.fold_in(ks[8], 1), (dim, hidden_dim),
                                jnp.float32) / dim ** 0.5,
            W2=jax.random.normal(jax.random.fold_in(ks[8], 2), (hidden_dim, dim),
                                 jnp.float32) / hidden_dim ** 0.5,
        ))
    return params


if __name__ == "__main__":
    num_layers, dim, head_dim, hidden_dim, n_heads = 2, 32, 8, 64, 4
    B, S = 2, 8

    key = jax.random.PRNGKey(0)
    kx, kp = jax.random.split(key)
    x = jax.random.normal(kx, (B, S, dim), jnp.float32)
    params = init_params(kp, num_layers, dim, head_dim, hidden_dim, n_heads)

    cos_p, sin_p, freqs_cis = rope_tables(S, head_dim, n_heads)
    # f32 MXU path for a tight parity check; pass mxu_dtype/weight_dtype=bf16 in
    # production (halves weight HBM/VMEM, native MXU rate; needs looser tolerance).
    packed = pack_params(params, n_heads, head_dim, weight_dtype=jnp.float32)

    out = transformer_forward(x, packed, (cos_p, sin_p),
                              n_heads, head_dim, hidden_dim,
                              mxu_dtype=jnp.float32)
    out = jax.block_until_ready(out)

    ref = reference_forward(x, params, freqs_cis, n_heads, head_dim)
    ref = jax.block_until_ready(ref)

    assert out.shape == (B, S, dim)
    err = float(jnp.max(jnp.abs(out - ref)))
    assert jnp.allclose(out, ref, rtol=1e-3, atol=1e-3), f"max abs err {err}"
    print("KERNEL_OK")
</pallas_src>

<mosaic_0001>
module attributes {stable_mosaic.version = 11 : i64} {
  func.func @_layer_kernel(%arg0: i32, %arg1: memref<1x8x32xf32, #tpu.memory_space<vmem>>, %arg2: memref<8x4xf32, #tpu.memory_space<vmem>>, %arg3: memref<8x4xf32, #tpu.memory_space<vmem>>, %arg4: memref<1x32xf32, #tpu.memory_space<vmem>>, %arg5: memref<1x32xf32, #tpu.memory_space<vmem>>, %arg6: memref<32x96xf32, #tpu.memory_space<vmem>>, %arg7: memref<32x32xf32, #tpu.memory_space<vmem>>, %arg8: memref<1x32xf32, #tpu.memory_space<vmem>>, %arg9: memref<1x32xf32, #tpu.memory_space<vmem>>, %arg10: memref<32x128xf32, #tpu.memory_space<vmem>>, %arg11: memref<64x32xf32, #tpu.memory_space<vmem>>, %arg12: memref<1x8x32xf32, #tpu.memory_space<vmem>>, %arg13: memref<4x8x24xf32, #tpu.memory_space<vmem>>, %arg14: memref<8x32xf32, #tpu.memory_space<vmem>>) attributes {dimension_semantics = [#tpu.dimension_semantics<parallel>], iteration_bounds = array<i64: 2>, scalar_prefetch = 0 : i64, scratch_operands = 2 : i64, tpu.core_type = #tpu.core_type<tc>, window_params = [{transform_indices = @transform_0, window_bounds = array<i64: 1, 8, 32>}, {pipeline_mode = #tpu.pipeline_mode<synchronous>, transform_indices = @transform_1, window_bounds = array<i64: 8, 4>}, {pipeline_mode = #tpu.pipeline_mode<synchronous>, transform_indices = @transform_2, window_bounds = array<i64: 8, 4>}, {pipeline_mode = #tpu.pipeline_mode<synchronous>, transform_indices = @transform_3, window_bounds = array<i64: 1, 32>}, {pipeline_mode = #tpu.pipeline_mode<synchronous>, transform_indices = @transform_4, window_bounds = array<i64: 1, 32>}, {pipeline_mode = #tpu.pipeline_mode<synchronous>, transform_indices = @transform_5, window_bounds = array<i64: 32, 96>}, {pipeline_mode = #tpu.pipeline_mode<synchronous>, transform_indices = @transform_6, window_bounds = array<i64: 32, 32>}, {pipeline_mode = #tpu.pipeline_mode<synchronous>, transform_indices = @transform_7, window_bounds = array<i64: 1, 32>}, {pipeline_mode = #tpu.pipeline_mode<synchronous>, transform_indices = @transform_8, window_bounds = array<i64: 1, 32>}, {pipeline_mode = #tpu.pipeline_mode<synchronous>, transform_indices = @transform_9, window_bounds = array<i64: 32, 128>}, {pipeline_mode = #tpu.pipeline_mode<synchronous>, transform_indices = @transform_10, window_bounds = array<i64: 64, 32>}, {transform_indices = @transform_11, window_bounds = array<i64: 1, 8, 32>}]} {
    %c0 = arith.constant 0 : index
    %c0_0 = arith.constant 0 : index
    %c0_1 = arith.constant 0 : index
    %0 = vector.load %arg1[%c0, %c0_0, %c0_1] : memref<1x8x32xf32, #tpu.memory_space<vmem>>, vector<1x8x32xf32>
    %1 = vector.shape_cast %0 : vector<1x8x32xf32> to vector<8x32xf32>
    %c0_2 = arith.constant 0 : index
    %c0_3 = arith.constant 0 : index
    %2 = vector.load %arg4[%c0_2, %c0_3] : memref<1x32xf32, #tpu.memory_space<vmem>>, vector<1x32xf32>
    %c0_4 = arith.constant 0 : index
    %c0_5 = arith.constant 0 : index
    %3 = vector.load %arg5[%c0_4, %c0_5] : memref<1x32xf32, #tpu.memory_space<vmem>>, vector<1x32xf32>
    %cst = arith.constant dense<0.000000e+00> : vector<8xf32>
    %4 = vector.multi_reduction <add>, %1, %cst [1] : vector<8x32xf32> to vector<8xf32>
    %5 = vector.shape_cast %4 : vector<8xf32> to vector<8x1xf32>
    %cst_6 = arith.constant 3.200000e+01 : f32
    %6 = vector.broadcast %cst_6 : f32 to vector<8x1xf32>
    %7 = arith.divf %5, %6 : vector<8x1xf32>
    %8 = vector.broadcast %7 : vector<8x1xf32> to vector<8x32xf32>
    %9 = arith.subf %1, %8 : vector<8x32xf32>
    %10 = arith.mulf %9, %9 : vector<8x32xf32>
    %cst_7 = arith.constant dense<0.000000e+00> : vector<8xf32>
    %11 = vector.multi_reduction <add>, %10, %cst_7 [1] : vector<8x32xf32> to vector<8xf32>
    %12 = vector.shape_cast %11 : vector<8xf32> to vector<8x1xf32>
    %cst_8 = arith.constant 3.200000e+01 : f32
    %13 = vector.broadcast %cst_8 : f32 to vector<8x1xf32>
    %14 = arith.divf %12, %13 : vector<8x1xf32>
    %15 = vector.broadcast %7 : vector<8x1xf32> to vector<8x32xf32>
    %16 = arith.subf %1, %15 : vector<8x32xf32>
    %cst_9 = arith.constant 9.99999974E-6 : f32
    %17 = vector.broadcast %cst_9 : f32 to vector<8x1xf32>
    %18 = arith.addf %14, %17 : vector<8x1xf32>
    %19 = math.rsqrt %18 : vector<8x1xf32>
    %20 = vector.broadcast %19 : vector<8x1xf32> to vector<8x32xf32>
    %21 = arith.mulf %16, %20 : vector<8x32xf32>
    %22 = vector.broadcast %2 : vector<1x32xf32> to vector<8x32xf32>
    %23 = arith.mulf %21, %22 : vector<8x32xf32>
    %24 = vector.broadcast %3 : vector<1x32xf32> to vector<8x32xf32>
    %25 = arith.addf %23, %24 : vector<8x32xf32>
    %c0_10 = arith.constant 0 : index
    %c0_11 = arith.constant 0 : index
    %26 = vector.load %arg6[%c0_10, %c0_11] : memref<32x96xf32, #tpu.memory_space<vmem>>, vector<32x96xf32>
    %cst_12 = arith.constant dense<0.000000e+00> : vector<8x96xf32>
    %27 = tpu.matmul %25, %26, %cst_12 {dimension_numbers = #tpu.dot_dimension_numbers<[1], [0], [0], [1], [0, 0, 1, 1], [], []>} : vector<8x32xf32>, vector<32x96xf32>, vector<8x96xf32> -> vector<8x96xf32>
    %28 = vector.extract_strided_slice %27 {offsets = [0, 0], sizes = [2, 96], strides = [1, 1]} : vector<8x96xf32> to vector<2x96xf32>
    %29 = vector.extract_strided_slice %28 {offsets = [0, 0], sizes = [2, 24], strides = [1, 1]} : vector<2x96xf32> to vector<2x24xf32>
    %c0_13 = arith.constant 0 : index
    %c0_14 = arith.constant 0 : index
    %c0_15 = arith.constant 0 : index
    %30 = vector.load %arg13[%c0_13, %c0_14, %c0_15] : memref<4x8x24xf32, #tpu.memory_space<vmem>>, vector<1x2x24xf32>
    %31 = vector.shape_cast %30 : vector<1x2x24xf32> to vector<2x24xf32>
    %32 = vector.shape_cast %29 : vector<2x24xf32> to vector<1x2x24xf32>
    tpu.vector_store %arg13[%c0_13, %c0_14, %c0_15], %32 {strides = array<i32>} : memref<4x8x24xf32, #tpu.memory_space<vmem>>, vector<1x2x24xf32>,
    %33 = vector.extract_strided_slice %28 {offsets = [0, 24], sizes = [2, 24], strides = [1, 1]} : vector<2x96xf32> to vector<2x24xf32>
    %c0_16 = arith.constant 0 : index
    %c2 = arith.constant 2 : index
    %c0_17 = arith.constant 0 : index
    %34 = vector.load %arg13[%c0_16, %c2, %c0_17] : memref<4x8x24xf32, #tpu.memory_space<vmem>>, vector<1x2x24xf32>
    %35 = vector.shape_cast %34 : vector<1x2x24xf32> to vector<2x24xf32>
    %36 = vector.shape_cast %33 : vector<2x24xf32> to vector<1x2x24xf32>
    tpu.vector_store %arg13[%c0_16, %c2, %c0_17], %36 {strides = array<i32>} : memref<4x8x24xf32, #tpu.memory_space<vmem>>, vector<1x2x24xf32>,
    %37 = vector.extract_strided_slice %28 {offsets = [0, 48], sizes = [2, 24], strides = [1, 1]} : vector<2x96xf32> to vector<2x24xf32>
    %c0_18 = arith.constant 0 : index
    %c4 = arith.constant 4 : index
    %c0_19 = arith.constant 0 : index
    %38 = vector.load %arg13[%c0_18, %c4, %c0_19] : memref<4x8x24xf32, #tpu.memory_space<vmem>>, vector<1x2x24xf32>
    %39 = vector.shape_cast %38 : vector<1x2x24xf32> to vector<2x24xf32>
    %40 = vector.shape_cast %37 : vector<2x24xf32> to vector<1x2x24xf32>
    tpu.vector_store %arg13[%c0_18, %c4, %c0_19], %40 {strides = array<i32>} : memref<4x8x24xf32, #tpu.memory_space<vmem>>, vector<1x2x24xf32>,
    %41 = vector.extract_strided_slice %28 {offsets = [0, 72], sizes = [2, 24], strides = [1, 1]} : vector<2x96xf32> to vector<2x24xf32>
    %c0_20 = arith.constant 0 : index
    %c6 = arith.constant 6 : index
    %c0_21 = arith.constant 0 : index
    %42 = vector.load %arg13[%c0_20, %c6, %c0_21] : memref<4x8x24xf32, #tpu.memory_space<vmem>>, vector<1x2x24xf32>
    %43 = vector.shape_cast %42 : vector<1x2x24xf32> to vector<2x24xf32>
    %44 = vector.shape_cast %41 : vector<2x24xf32> to vector<1x2x24xf32>
    tpu.vector_store %arg13[%c0_20, %c6, %c0_21], %44 {strides = array<i32>} : memref<4x8x24xf32, #tpu.memory_space<vmem>>, vector<1x2x24xf32>,
    %45 = vector.extract_strided_slice %27 {offsets = [2, 0], sizes = [2, 96], strides = [1, 1]} : vector<8x96xf32> to vector<2x96xf32>
    %46 = vector.extract_strided_slice %45 {offsets = [0, 0], sizes = [2, 24], strides = [1, 1]} : vector<2x96xf32> to vector<2x24xf32>
    %c1 = arith.constant 1 : index
    %c0_22 = arith.constant 0 : index
    %c0_23 = arith.constant 0 : index
    %47 = vector.load %arg13[%c1, %c0_22, %c0_23] : memref<4x8x24xf32, #tpu.memory_space<vmem>>, vector<1x2x24xf32>
    %48 = vector.shape_cast %47 : vector<1x2x24xf32> to vector<2x24xf32>
    %49 = vector.shape_cast %46 : vector<2x24xf32> to vector<1x2x24xf32>
    tpu.vector_store %arg13[%c1, %c0_22, %c0_23], %49 {strides = array<i32>} : memref<4x8x24xf32, #tpu.memory_space<vmem>>, vector<1x2x24xf32>,
    %50 = vector.extract_strided_slice %45 {offsets = [0, 24], sizes = [2, 24], strides = [1, 1]} : vector<2x96xf32> to vector<2x24xf32>
    %c1_24 = arith.constant 1 : index
    %c2_25 = arith.constant 2 : index
    %c0_26 = arith.constant 0 : index
    %51 = vector.load %arg13[%c1_24, %c2_25, %c0_26] : memref<4x8x24xf32, #tpu.memory_space<vmem>>, vector<1x2x24xf32>
    %52 = vector.shape_cast %51 : vector<1x2x24xf32> to vector<2x24xf32>
    %53 = vector.shape_cast %50 : vector<2x24xf32> to vector<1x2x24xf32>
    tpu.vector_store %arg13[%c1_24, %c2_25, %c0_26], %53 {strides = array<i32>} : memref<4x8x24xf32, #tpu.memory_space<vmem>>, vector<1x2x24xf32>,
    %54 = vector.extract_strided_slice %45 {offsets = [0, 48], sizes = [2, 24], strides = [1, 1]} : vector<2x96xf32> to vector<2x24xf32>
    %c1_27 = arith.constant 1 : index
    %c4_28 = arith.constant 4 : index
    %c0_29 = arith.constant 0 : index
    %55 = vector.load %arg13[%c1_27, %c4_28, %c0_29] : memref<4x8x24xf32, #tpu.memory_space<vmem>>, vector<1x2x24xf32>
    %56 = vector.shape_cast %55 : vector<1x2x24xf32> to vector<2x24xf32>
    %57 = vector.shape_cast %54 : vector<2x24xf32> to vector<1x2x24xf32>
    tpu.vector_store %arg13[%c1_27, %c4_28, %c0_29], %57 {strides = array<i32>} : memref<4x8x24xf32, #tpu.memory_space<vmem>>, vector<1x2x24xf32>,
    %58 = vector.extract_strided_slice %45 {offsets = [0, 72], sizes = [2, 24], strides = [1, 1]} : vector<2x96xf32> to vector<2x24xf32>
    %c1_30 = arith.constant 1 : index
    %c6_31 = arith.constant 6 : index
    %c0_32 = arith.constant 0 : index
    %59 = vector.load %arg13[%c1_30, %c6_31, %c0_32] : memref<4x8x24xf32, #tpu.memory_space<vmem>>, vector<1x2x24xf32>
    %60 = vector.shape_cast %59 : vector<1x2x24xf32> to vector<2x24xf32>
    %61 = vector.shape_cast %58 : vector<2x24xf32> to vector<1x2x24xf32>
    tpu.vector_store %arg13[%c1_30, %c6_31, %c0_32], %61 {strides = array<i32>} : memref<4x8x24xf32, #tpu.memory_space<vmem>>, vector<1x2x24xf32>,
    %62 = vector.extract_strided_slice %27 {offsets = [4, 0], sizes = [2, 96], strides = [1, 1]} : vector<8x96xf32> to vector<2x96xf32>
    %63 = vector.extract_strided_slice %62 {offsets = [0, 0], sizes = [2, 24], strides = [1, 1]} : vector<2x96xf32> to vector<2x24xf32>
    %c2_33 = arith.constant 2 : index
    %c0_34 = arith.constant 0 : index
    %c0_35 = arith.constant 0 : index
    %64 = vector.load %arg13[%c2_33, %c0_34, %c0_35] : memref<4x8x24xf32, #tpu.memory_space<vmem>>, vector<1x2x24xf32>
    %65 = vector.shape_cast %64 : vector<1x2x24xf32> to vector<2x24xf32>
    %66 = vector.shape_cast %63 : vector<2x24xf32> to vector<1x2x24xf32>
    tpu.vector_store %arg13[%c2_33, %c0_34, %c0_35], %66 {strides = array<i32>} : memref<4x8x24xf32, #tpu.memory_space<vmem>>, vector<1x2x24xf32>,
    %67 = vector.extract_strided_slice %62 {offsets = [0, 24], sizes = [2, 24], strides = [1, 1]} : vector<2x96xf32> to vector<2x24xf32>
    %c2_36 = arith.constant 2 : index
    %c2_37 = arith.constant 2 : index
    %c0_38 = arith.constant 0 : index
    %68 = vector.load %arg13[%c2_36, %c2_37, %c0_38] : memref<4x8x24xf32, #tpu.memory_space<vmem>>, vector<1x2x24xf32>
    %69 = vector.shape_cast %68 : vector<1x2x24xf32> to vector<2x24xf32>
    %70 = vector.shape_cast %67 : vector<2x24xf32> to vector<1x2x24xf32>
    tpu.vector_store %arg13[%c2_36, %c2_37, %c0_38], %70 {strides = array<i32>} : memref<4x8x24xf32, #tpu.memory_space<vmem>>, vector<1x2x24xf32>,
    %71 = vector.extract_strided_slice %62 {offsets = [0, 48], sizes = [2, 24], strides = [1, 1]} : vector<2x96xf32> to vector<2x24xf32>
    %c2_39 = arith.constant 2 : index
    %c4_40 = arith.constant 4 : index
    %c0_41 = arith.constant 0 : index
    %72 = vector.load %arg13[%c2_39, %c4_40, %c0_41] : memref<4x8x24xf32, #tpu.memory_space<vmem>>, vector<1x2x24xf32>
    %73 = vector.shape_cast %72 : vector<1x2x24xf32> to vector<2x24xf32>
    %74 = vector.shape_cast %71 : vector<2x24xf32> to vector<1x2x24xf32>
    tpu.vector_store %arg13[%c2_39, %c4_40, %c0_41], %74 {strides = array<i32>} : memref<4x8x24xf32, #tpu.memory_space<vmem>>, vector<1x2x24xf32>,
    %75 = vector.extract_strided_slice %62 {offsets = [0, 72], sizes = [2, 24], strides = [1, 1]} : vector<2x96xf32> to vector<2x24xf32>
    %c2_42 = arith.constant 2 : index
    %c6_43 = arith.constant 6 : index
    %c0_44 = arith.constant 0 : index
    %76 = vector.load %arg13[%c2_42, %c6_43, %c0_44] : memref<4x8x24xf32, #tpu.memory_space<vmem>>, vector<1x2x24xf32>
    %77 = vector.shape_cast %76 : vector<1x2x24xf32> to vector<2x24xf32>
    %78 = vector.shape_cast %75 : vector<2x24xf32> to vector<1x2x24xf32>
    tpu.vector_store %arg13[%c2_42, %c6_43, %c0_44], %78 {strides = array<i32>} : memref<4x8x24xf32, #tpu.memory_space<vmem>>, vector<1x2x24xf32>,
    %79 = vector.extract_strided_slice %27 {offsets = [6, 0], sizes = [2, 96], strides = [1, 1]} : vector<8x96xf32> to vector<2x96xf32>
    %80 = vector.extract_strided_slice %79 {offsets = [0, 0], sizes = [2, 24], strides = [1, 1]} : vector<2x96xf32> to vector<2x24xf32>
    %c3 = arith.constant 3 : index
    %c0_45 = arith.constant 0 : index
    %c0_46 = arith.constant 0 : index
    %81 = vector.load %arg13[%c3, %c0_45, %c0_46] : memref<4x8x24xf32, #tpu.memory_space<vmem>>, vector<1x2x24xf32>
    %82 = vector.shape_cast %81 : vector<1x2x24xf32> to vector<2x24xf32>
    %83 = vector.shape_cast %80 : vector<2x24xf32> to vector<1x2x24xf32>
    tpu.vector_store %arg13[%c3, %c0_45, %c0_46], %83 {strides = array<i32>} : memref<4x8x24xf32, #tpu.memory_space<vmem>>, vector<1x2x24xf32>,
    %84 = vector.extract_strided_slice %79 {offsets = [0, 24], sizes = [2, 24], strides = [1, 1]} : vector<2x96xf32> to vector<2x24xf32>
    %c3_47 = arith.constant 3 : index
    %c2_48 = arith.constant 2 : index
    %c0_49 = arith.constant 0 : index
    %85 = vector.load %arg13[%c3_47, %c2_48, %c0_49] : memref<4x8x24xf32, #tpu.memory_space<vmem>>, vector<1x2x24xf32>
    %86 = vector.shape_cast %85 : vector<1x2x24xf32> to vector<2x24xf32>
    %87 = vector.shape_cast %84 : vector<2x24xf32> to vector<1x2x24xf32>
    tpu.vector_store %arg13[%c3_47, %c2_48, %c0_49], %87 {strides = array<i32>} : memref<4x8x24xf32, #tpu.memory_space<vmem>>, vector<1x2x24xf32>,
    %88 = vector.extract_strided_slice %79 {offsets = [0, 48], sizes = [2, 24], strides = [1, 1]} : vector<2x96xf32> to vector<2x24xf32>
    %c3_50 = arith.constant 3 : index
    %c4_51 = arith.constant 4 : index
    %c0_52 = arith.constant 0 : index
    %89 = vector.load %arg13[%c3_50, %c4_51, %c0_52] : memref<4x8x24xf32, #tpu.memory_space<vmem>>, vector<1x2x24xf32>
    %90 = vector.shape_cast %89 : vector<1x2x24xf32> to vector<2x24xf32>
    %91 = vector.shape_cast %88 : vector<2x24xf32> to vector<1x2x24xf32>
    tpu.vector_store %arg13[%c3_50, %c4_51, %c0_52], %91 {strides = array<i32>} : memref<4x8x24xf32, #tpu.memory_space<vmem>>, vector<1x2x24xf32>,
    %92 = vector.extract_strided_slice %79 {offsets = [0, 72], sizes = [2, 24], strides = [1, 1]} : vector<2x96xf32> to vector<2x24xf32>
    %c3_53 = arith.constant 3 : index
    %c6_54 = arith.constant 6 : index
    %c0_55 = arith.constant 0 : index
    %93 = vector.load %arg13[%c3_53, %c6_54, %c0_55] : memref<4x8x24xf32, #tpu.memory_space<vmem>>, vector<1x2x24xf32>
    %94 = vector.shape_cast %93 : vector<1x2x24xf32> to vector<2x24xf32>
    %95 = vector.shape_cast %92 : vector<2x24xf32> to vector<1x2x24xf32>
    tpu.vector_store %arg13[%c3_53, %c6_54, %c0_55], %95 {strides = array<i32>} : memref<4x8x24xf32, #tpu.memory_space<vmem>>, vector<1x2x24xf32>,
    %c0_56 = arith.constant 0 : index
    %c0_57 = arith.constant 0 : index
    %c0_58 = arith.constant 0 : index
    %96 = vector.load %arg13[%c0_56, %c0_57, %c0_58] : memref<4x8x24xf32, #tpu.memory_space<vmem>>, vector<4x8x24xf32>
    %97 = vector.extract_strided_slice %96 {offsets = [0, 0, 0], sizes = [4, 8, 4], strides = [1, 1, 1]} : vector<4x8x24xf32> to vector<4x8x4xf32>
    %98 = vector.extract_strided_slice %96 {offsets = [0, 0, 4], sizes = [4, 8, 4], strides = [1, 1, 1]} : vector<4x8x24xf32> to vector<4x8x4xf32>
    %99 = vector.extract_strided_slice %96 {offsets = [0, 0, 8], sizes = [4, 8, 4], strides = [1, 1, 1]} : vector<4x8x24xf32> to vector<4x8x4xf32>
    %100 = vector.extract_strided_slice %96 {offsets = [0, 0, 12], sizes = [4, 8, 4], strides = [1, 1, 1]} : vector<4x8x24xf32> to vector<4x8x4xf32>
    %101 = vector.extract_strided_slice %96 {offsets = [0, 0, 16], sizes = [4, 8, 8], strides = [1, 1, 1]} : vector<4x8x24xf32> to vector<4x8x8xf32>
    %c0_59 = arith.constant 0 : index
    %c0_60 = arith.constant 0 : index
    %102 = vector.load %arg2[%c0_59, %c0_60] : memref<8x4xf32, #tpu.memory_space<vmem>>, vector<8x4xf32>
    %103 = vector.shape_cast %102 : vector<8x4xf32> to vector<1x8x4xf32>
    %c0_61 = arith.constant 0 : index
    %c0_62 = arith.constant 0 : index
    %104 = vector.load %arg3[%c0_61, %c0_62] : memref<8x4xf32, #tpu.memory_space<vmem>>, vector<8x4xf32>
    %105 = vector.shape_cast %104 : vector<8x4xf32> to vector<1x8x4xf32>
    %106 = vector.broadcast %103 : vector<1x8x4xf32> to vector<4x8x4xf32>
    %107 = arith.mulf %97, %106 : vector<4x8x4xf32>
    %108 = vector.broadcast %105 : vector<1x8x4xf32> to vector<4x8x4xf32>
    %109 = arith.mulf %98, %108 : vector<4x8x4xf32>
    %110 = arith.subf %107, %109 : vector<4x8x4xf32>
    %111 = vector.broadcast %105 : vector<1x8x4xf32> to vector<4x8x4xf32>
    %112 = arith.mulf %97, %111 : vector<4x8x4xf32>
    %113 = vector.broadcast %103 : vector<1x8x4xf32> to vector<4x8x4xf32>
    %114 = arith.mulf %98, %113 : vector<4x8x4xf32>
    %115 = arith.addf %112, %114 : vector<4x8x4xf32>
    %116 = vector.broadcast %103 : vector<1x8x4xf32> to vector<4x8x4xf32>
    %117 = arith.mulf %99, %116 : vector<4x8x4xf32>
    %118 = vector.broadcast %105 : vector<1x8x4xf32> to vector<4x8x4xf32>
    %119 = arith.mulf %100, %118 : vector<4x8x4xf32>
    %120 = arith.subf %117, %119 : vector<4x8x4xf32>
    %121 = vector.broadcast %105 : vector<1x8x4xf32> to vector<4x8x4xf32>
    %122 = arith.mulf %99, %121 : vector<4x8x4xf32>
    %123 = vector.broadcast %103 : vector<1x8x4xf32> to vector<4x8x4xf32>
    %124 = arith.mulf %100, %123 : vector<4x8x4xf32>
    %125 = arith.addf %122, %124 : vector<4x8x4xf32>
    "tpu.trace_start"() <{level = 10 : i32, message = "hqd,hkd->hqk"}> : () -> ()
    %cst_63 = arith.constant dense<0.000000e+00> : vector<4x8x8xf32>
    %126 = tpu.matmul %110, %120, %cst_63 {dimension_numbers = #tpu.dot_dimension_numbers<[2], [2], [1], [1], [0, 0, 0, 1, 1, 1], [0], [0]>} : vector<4x8x4xf32>, vector<4x8x4xf32>, vector<4x8x8xf32> -> vector<4x8x8xf32>
    %cst_64 = arith.constant dense<0.000000e+00> : vector<4x8x8xf32>
    %127 = tpu.matmul %115, %125, %cst_64 {dimension_numbers = #tpu.dot_dimension_numbers<[2], [2], [1], [1], [0, 0, 0, 1, 1, 1], [0], [0]>} : vector<4x8x4xf32>, vector<4x8x4xf32>, vector<4x8x8xf32> -> vector<4x8x8xf32>
    "tpu.trace_stop"() : () -> ()
    %128 = arith.addf %126, %127 : vector<4x8x8xf32>
    %cst_65 = arith.constant dense<0xFF800000> : vector<4x8xf32>
    %129 = vector.multi_reduction <maximumf>, %128, %cst_65 [2] : vector<4x8x8xf32> to vector<4x8xf32>
    %130 = vector.shape_cast %129 : vector<4x8xf32> to vector<4x8x1xf32>
    %131 = vector.broadcast %130 : vector<4x8x1xf32> to vector<4x8x8xf32>
    %132 = arith.subf %128, %131 : vector<4x8x8xf32>
    %133 = math.exp %132 : vector<4x8x8xf32>
    %cst_66 = arith.constant dense<0.000000e+00> : vector<4x8xf32>
    %134 = vector.multi_reduction <add>, %133, %cst_66 [2] : vector<4x8x8xf32> to vector<4x8xf32>
    %135 = vector.shape_cast %134 : vector<4x8xf32> to vector<4x8x1xf32>
    %136 = tpu.reciprocal %135 {approx = true} : vector<4x8x1xf32> -> vector<4x8x1xf32>
    %137 = arith.mulf %135, %136 : vector<4x8x1xf32>
    %cst_67 = arith.constant 2.000000e+00 : f32
    %138 = vector.broadcast %cst_67 : f32 to vector<4x8x1xf32>
    %139 = arith.subf %138, %137 : vector<4x8x1xf32>
    %140 = arith.mulf %136, %139 : vector<4x8x1xf32>
    %141 = vector.broadcast %140 : vector<4x8x1xf32> to vector<4x8x8xf32>
    %142 = arith.mulf %133, %141 : vector<4x8x8xf32>
    "tpu.trace_start"() <{level = 10 : i32, message = "hqk,hkd->hqd"}> : () -> ()
    %cst_68 = arith.constant dense<0.000000e+00> : vector<4x8x8xf32>
    %143 = tpu.matmul %142, %101, %cst_68 {dimension_numbers = #tpu.dot_dimension_numbers<[2], [1], [1], [2], [0, 0, 0, 1, 1, 2], [0], [0]>} : vector<4x8x8xf32>, vector<4x8x8xf32>, vector<4x8x8xf32> -> vector<4x8x8xf32>
    "tpu.trace_stop"() : () -> ()
    %144 = vector.extract_strided_slice %143 {offsets = [0, 0, 0], sizes = [1, 2, 8], strides = [1, 1, 1]} : vector<4x8x8xf32> to vector<1x2x8xf32>
    %145 = vector.shape_cast %144 : vector<1x2x8xf32> to vector<2x8xf32>
    %c0_69 = arith.constant 0 : index
    %c0_70 = arith.constant 0 : index
    %146 = vector.load %arg14[%c0_69, %c0_70] : memref<8x32xf32, #tpu.memory_space<vmem>>, vector<2x8xf32>
    tpu.vector_store %arg14[%c0_69, %c0_70], %145 {strides = array<i32>} : memref<8x32xf32, #tpu.memory_space<vmem>>, vector<2x8xf32>,
    %147 = vector.extract_strided_slice %143 {offsets = [0, 2, 0], sizes = [1, 2, 8], strides = [1, 1, 1]} : vector<4x8x8xf32> to vector<1x2x8xf32>
    %148 = vector.shape_cast %147 : vector<1x2x8xf32> to vector<2x8xf32>
    %c0_71 = arith.constant 0 : index
    %c8 = arith.constant 8 : index
    %149 = vector.load %arg14[%c0_71, %c8] : memref<8x32xf32, #tpu.memory_space<vmem>>, vector<2x8xf32>
    tpu.vector_store %arg14[%c0_71, %c8], %148 {strides = array<i32>} : memref<8x32xf32, #tpu.memory_space<vmem>>, vector<2x8xf32>,
    %150 = vector.extract_strided_slice %143 {offsets = [0, 4, 0], sizes = [1, 2, 8], strides = [1, 1, 1]} : vector<4x8x8xf32> to vector<1x2x8xf32>
    %151 = vector.shape_cast %150 : vector<1x2x8xf32> to vector<2x8xf32>
    %c0_72 = arith.constant 0 : index
    %c16 = arith.constant 16 : index
    %152 = vector.load %arg14[%c0_72, %c16] : memref<8x32xf32, #tpu.memory_space<vmem>>, vector<2x8xf32>
    tpu.vector_store %arg14[%c0_72, %c16], %151 {strides = array<i32>} : memref<8x32xf32, #tpu.memory_space<vmem>>, vector<2x8xf32>,
    %153 = vector.extract_strided_slice %143 {offsets = [0, 6, 0], sizes = [1, 2, 8], strides = [1, 1, 1]} : vector<4x8x8xf32> to vector<1x2x8xf32>
    %154 = vector.shape_cast %153 : vector<1x2x8xf32> to vector<2x8xf32>
    %c0_73 = arith.constant 0 : index
    %c24 = arith.constant 24 : index
    %155 = vector.load %arg14[%c0_73, %c24] : memref<8x32xf32, #tpu.memory_space<vmem>>, vector<2x8xf32>
    tpu.vector_store %arg14[%c0_73, %c24], %154 {strides = array<i32>} : memref<8x32xf32, #tpu.memory_space<vmem>>, vector<2x8xf32>,
    %156 = vector.extract_strided_slice %143 {offsets = [1, 0, 0], sizes = [1, 2, 8], strides = [1, 1, 1]} : vector<4x8x8xf32> to vector<1x2x8xf32>
    %157 = vector.shape_cast %156 : vector<1x2x8xf32> to vector<2x8xf32>
    %c2_74 = arith.constant 2 : index
    %c0_75 = arith.constant 0 : index
    %158 = vector.load %arg14[%c2_74, %c0_75] : memref<8x32xf32, #tpu.memory_space<vmem>>, vector<2x8xf32>
    tpu.vector_store %arg14[%c2_74, %c0_75], %157 {strides = array<i32>} : memref<8x32xf32, #tpu.memory_space<vmem>>, vector<2x8xf32>,
    %159 = vector.extract_strided_slice %143 {offsets = [1, 2, 0], sizes = [1, 2, 8], strides = [1, 1, 1]} : vector<4x8x8xf32> to vector<1x2x8xf32>
    %160 = vector.shape_cast %159 : vector<1x2x8xf32> to vector<2x8xf32>
    %c2_76 = arith.constant 2 : index
    %c8_77 = arith.constant 8 : index
    %161 = vector.load %arg14[%c2_76, %c8_77] : memref<8x32xf32, #tpu.memory_space<vmem>>, vector<2x8xf32>
    tpu.vector_store %arg14[%c2_76, %c8_77], %160 {strides = array<i32>} : memref<8x32xf32, #tpu.memory_space<vmem>>, vector<2x8xf32>,
    %162 = vector.extract_strided_slice %143 {offsets = [1, 4, 0], sizes = [1, 2, 8], strides = [1, 1, 1]} : vector<4x8x8xf32> to vector<1x2x8xf32>
    %163 = vector.shape_cast %162 : vector<1x2x8xf32> to vector<2x8xf32>
    %c2_78 = arith.constant 2 : index
    %c16_79 = arith.constant 16 : index
    %164 = vector.load %arg14[%c2_78, %c16_79] : memref<8x32xf32, #tpu.memory_space<vmem>>, vector<2x8xf32>
    tpu.vector_store %arg14[%c2_78, %c16_79], %163 {strides = array<i32>} : memref<8x32xf32, #tpu.memory_space<vmem>>, vector<2x8xf32>,
    %165 = vector.extract_strided_slice %143 {offsets = [1, 6, 0], sizes = [1, 2, 8], strides = [1, 1, 1]} : vector<4x8x8xf32> to vector<1x2x8xf32>
    %166 = vector.shape_cast %165 : vector<1x2x8xf32> to vector<2x8xf32>
    %c2_80 = arith.constant 2 : index
    %c24_81 = arith.constant 24 : index
    %167 = vector.load %arg14[%c2_80, %c24_81] : memref<8x32xf32, #tpu.memory_space<vmem>>, vector<2x8xf32>
    tpu.vector_store %arg14[%c2_80, %c24_81], %166 {strides = array<i32>} : memref<8x32xf32, #tpu.memory_space<vmem>>, vector<2x8xf32>,
    %168 = vector.extract_strided_slice %143 {offsets = [2, 0, 0], sizes = [1, 2, 8], strides = [1, 1, 1]} : vector<4x8x8xf32> to vector<1x2x8xf32>
    %169 = vector.shape_cast %168 : vector<1x2x8xf32> to vector<2x8xf32>
    %c4_82 = arith.constant 4 : index
    %c0_83 = arith.constant 0 : index
    %170 = vector.load %arg14[%c4_82, %c0_83] : memref<8x32xf32, #tpu.memory_space<vmem>>, vector<2x8xf32>
    tpu.vector_store %arg14[%c4_82, %c0_83], %169 {strides = array<i32>} : memref<8x32xf32, #tpu.memory_space<vmem>>, vector<2x8xf32>,
    %171 = vector.extract_strided_slice %143 {offsets = [2, 2, 0], sizes = [1, 2, 8], strides = [1, 1, 1]} : vector<4x8x8xf32> to vector<1x2x8xf32>
    %172 = vector.shape_cast %171 : vector<1x2x8xf32> to vector<2x8xf32>
    %c4_84 = arith.constant 4 : index
    %c8_85 = arith.constant 8 : index
    %173 = vector.load %arg14[%c4_84, %c8_85] : memref<8x32xf32, #tpu.memory_space<vmem>>, vector<2x8xf32>
    tpu.vector_store %arg14[%c4_84, %c8_85], %172 {strides = array<i32>} : memref<8x32xf32, #tpu.memory_space<vmem>>, vector<2x8xf32>,
    %174 = vector.extract_strided_slice %143 {offsets = [2, 4, 0], sizes = [1, 2, 8], strides = [1, 1, 1]} : vector<4x8x8xf32> to vector<1x2x8xf32>
    %175 = vector.shape_cast %174 : vector<1x2x8xf32> to vector<2x8xf32>
    %c4_86 = arith.constant 4 : index
    %c16_87 = arith.constant 16 : index
    %176 = vector.load %arg14[%c4_86, %c16_87] : memref<8x32xf32, #tpu.memory_space<vmem>>, vector<2x8xf32>
    tpu.vector_store %arg14[%c4_86, %c16_87], %175 {strides = array<i32>} : memref<8x32xf32, #tpu.memory_space<vmem>>, vector<2x8xf32>,
    %177 = vector.extract_strided_slice %143 {offsets = [2, 6, 0], sizes = [1, 2, 8], strides = [1, 1, 1]} : vector<4x8x8xf32> to vector<1x2x8xf32>
    %178 = vector.shape_cast %177 : vector<1x2x8xf32> to vector<2x8xf32>
    %c4_88 = arith.constant 4 : index
    %c24_89 = arith.constant 24 : index
    %179 = vector.load %arg14[%c4_88, %c24_89] : memref<8x32xf32, #tpu.memory_space<vmem>>, vector<2x8xf32>
    tpu.vector_store %arg14[%c4_88, %c24_89], %178 {strides = array<i32>} : memref<8x32xf32, #tpu.memory_space<vmem>>, vector<2x8xf32>,
    %180 = vector.extract_strided_slice %143 {offsets = [3, 0, 0], sizes = [1, 2, 8], strides = [1, 1, 1]} : vector<4x8x8xf32> to vector<1x2x8xf32>
    %181 = vector.shape_cast %180 : vector<1x2x8xf32> to vector<2x8xf32>
    %c6_90 = arith.constant 6 : index
    %c0_91 = arith.constant 0 : index
    %182 = vector.load %arg14[%c6_90, %c0_91] : memref<8x32xf32, #tpu.memory_space<vmem>>, vector<2x8xf32>
    tpu.vector_store %arg14[%c6_90, %c0_91], %181 {strides = array<i32>} : memref<8x32xf32, #tpu.memory_space<vmem>>, vector<2x8xf32>,
    %183 = vector.extract_strided_slice %143 {offsets = [3, 2, 0], sizes = [1, 2, 8], strides = [1, 1, 1]} : vector<4x8x8xf32> to vector<1x2x8xf32>
    %184 = vector.shape_cast %183 : vector<1x2x8xf32> to vector<2x8xf32>
    %c6_92 = arith.constant 6 : index
    %c8_93 = arith.constant 8 : index
    %185 = vector.load %arg14[%c6_92, %c8_93] : memref<8x32xf32, #tpu.memory_space<vmem>>, vector<2x8xf32>
    tpu.vector_store %arg14[%c6_92, %c8_93], %184 {strides = array<i32>} : memref<8x32xf32, #tpu.memory_space<vmem>>, vector<2x8xf32>,
    %186 = vector.extract_strided_slice %143 {offsets = [3, 4, 0], sizes = [1, 2, 8], strides = [1, 1, 1]} : vector<4x8x8xf32> to vector<1x2x8xf32>
    %187 = vector.shape_cast %186 : vector<1x2x8xf32> to vector<2x8xf32>
    %c6_94 = arith.constant 6 : index
    %c16_95 = arith.constant 16 : index
    %188 = vector.load %arg14[%c6_94, %c16_95] : memref<8x32xf32, #tpu.memory_space<vmem>>, vector<2x8xf32>
    tpu.vector_store %arg14[%c6_94, %c16_95], %187 {strides = array<i32>} : memref<8x32xf32, #tpu.memory_space<vmem>>, vector<2x8xf32>,
    %189 = vector.extract_strided_slice %143 {offsets = [3, 6, 0], sizes = [1, 2, 8], strides = [1, 1, 1]} : vector<4x8x8xf32> to vector<1x2x8xf32>
    %190 = vector.shape_cast %189 : vector<1x2x8xf32> to vector<2x8xf32>
    %c6_96 = arith.constant 6 : index
    %c24_97 = arith.constant 24 : index
    %191 = vector.load %arg14[%c6_96, %c24_97] : memref<8x32xf32, #tpu.memory_space<vmem>>, vector<2x8xf32>
    tpu.vector_store %arg14[%c6_96, %c24_97], %190 {strides = array<i32>} : memref<8x32xf32, #tpu.memory_space<vmem>>, vector<2x8xf32>,
    %c0_98 = arith.constant 0 : index
    %c0_99 = arith.constant 0 : index
    %192 = vector.load %arg14[%c0_98, %c0_99] : memref<8x32xf32, #tpu.memory_space<vmem>>, vector<8x32xf32>
    %c0_100 = arith.constant 0 : index
    %c0_101 = arith.constant 0 : index
    %193 = vector.load %arg7[%c0_100, %c0_101] : memref<32x32xf32, #tpu.memory_space<vmem>>, vector<32x32xf32>
    %cst_102 = arith.constant dense<0.000000e+00> : vector<8x32xf32>
    %194 = tpu.matmul %192, %193, %cst_102 {dimension_numbers = #tpu.dot_dimension_numbers<[1], [0], [0], [1], [0, 0, 1, 1], [], []>} : vector<8x32xf32>, vector<32x32xf32>, vector<8x32xf32> -> vector<8x32xf32>
    %195 = arith.addf %1, %194 : vector<8x32xf32>
    %c0_103 = arith.constant 0 : index
    %c0_104 = arith.constant 0 : index
    %196 = vector.load %arg8[%c0_103, %c0_104] : memref<1x32xf32, #tpu.memory_space<vmem>>, vector<1x32xf32>
    %c0_105 = arith.constant 0 : index
    %c0_106 = arith.constant 0 : index
    %197 = vector.load %arg9[%c0_105, %c0_106] : memref<1x32xf32, #tpu.memory_space<vmem>>, vector<1x32xf32>
    %cst_107 = arith.constant dense<0.000000e+00> : vector<8xf32>
    %198 = vector.multi_reduction <add>, %195, %cst_107 [1] : vector<8x32xf32> to vector<8xf32>
    %199 = vector.shape_cast %198 : vector<8xf32> to vector<8x1xf32>
    %cst_108 = arith.constant 3.200000e+01 : f32
    %200 = vector.broadcast %cst_108 : f32 to vector<8x1xf32>
    %201 = arith.divf %199, %200 : vector<8x1xf32>
    %202 = vector.broadcast %201 : vector<8x1xf32> to vector<8x32xf32>
    %203 = arith.subf %195, %202 : vector<8x32xf32>
    %204 = arith.mulf %203, %203 : vector<8x32xf32>
    %cst_109 = arith.constant dense<0.000000e+00> : vector<8xf32>
    %205 = vector.multi_reduction <add>, %204, %cst_109 [1] : vector<8x32xf32> to vector<8xf32>
    %206 = vector.shape_cast %205 : vector<8xf32> to vector<8x1xf32>
    %cst_110 = arith.constant 3.200000e+01 : f32
    %207 = vector.broadcast %cst_110 : f32 to vector<8x1xf32>
    %208 = arith.divf %206, %207 : vector<8x1xf32>
    %209 = vector.broadcast %201 : vector<8x1xf32> to vector<8x32xf32>
    %210 = arith.subf %195, %209 : vector<8x32xf32>
    %cst_111 = arith.constant 9.99999974E-6 : f32
    %211 = vector.broadcast %cst_111 : f32 to vector<8x1xf32>
    %212 = arith.addf %208, %211 : vector<8x1xf32>
    %213 = math.rsqrt %212 : vector<8x1xf32>
    %214 = vector.broadcast %213 : vector<8x1xf32> to vector<8x32xf32>
    %215 = arith.mulf %210, %214 : vector<8x32xf32>
    %216 = vector.broadcast %196 : vector<1x32xf32> to vector<8x32xf32>
    %217 = arith.mulf %215, %216 : vector<8x32xf32>
    %218 = vector.broadcast %197 : vector<1x32xf32> to vector<8x32xf32>
    %219 = arith.addf %217, %218 : vector<8x32xf32>
    %c0_112 = arith.constant 0 : index
    %c0_113 = arith.constant 0 : index
    %220 = vector.load %arg10[%c0_112, %c0_113] : memref<32x128xf32, #tpu.memory_space<vmem>>, vector<32x128xf32>
    %cst_114 = arith.constant dense<0.000000e+00> : vector<8x128xf32>
    %221 = tpu.matmul %219, %220, %cst_114 {dimension_numbers = #tpu.dot_dimension_numbers<[1], [0], [0], [1], [0, 0, 1, 1], [], []>} : vector<8x32xf32>, vector<32x128xf32>, vector<8x128xf32> -> vector<8x128xf32>
    %222 = vector.extract_strided_slice %221 {offsets = [0, 0], sizes = [8, 64], strides = [1, 1]} : vector<8x128xf32> to vector<8x64xf32>
    %223 = vector.extract_strided_slice %221 {offsets = [0, 64], sizes = [8, 64], strides = [1, 1]} : vector<8x128xf32> to vector<8x64xf32>
    %224 = arith.negf %222 : vector<8x64xf32>
    %225 = math.exp %224 : vector<8x64xf32>
    %cst_115 = arith.constant 1.000000e+00 : f32
    %226 = vector.broadcast %cst_115 : f32 to vector<8x64xf32>
    %227 = arith.addf %226, %225 : vector<8x64xf32>
    %228 = arith.divf %226, %227 : vector<8x64xf32>
    %229 = arith.mulf %222, %228 : vector<8x64xf32>
    %230 = arith.mulf %229, %223 : vector<8x64xf32>
    %c0_116 = arith.constant 0 : index
    %c0_117 = arith.constant 0 : index
    %231 = vector.load %arg11[%c0_116, %c0_117] : memref<64x32xf32, #tpu.memory_space<vmem>>, vector<64x32xf32>
    %cst_118 = arith.constant dense<0.000000e+00> : vector<8x32xf32>
    %232 = tpu.matmul %230, %231, %cst_118 {dimension_numbers = #tpu.dot_dimension_numbers<[1], [0], [0], [1], [0, 0, 1, 1], [], []>} : vector<8x64xf32>, vector<64x32xf32>, vector<8x32xf32> -> vector<8x32xf32>
    %233 = arith.addf %195, %232 : vector<8x32xf32>
    %c0_119 = arith.constant 0 : index
    %c0_120 = arith.constant 0 : index
    %c0_121 = arith.constant 0 : index
    %234 = vector.load %arg12[%c0_119, %c0_120, %c0_121] : memref<1x8x32xf32, #tpu.memory_space<vmem>>, vector<1x8x32xf32>
    %235 = vector.shape_cast %234 : vector<1x8x32xf32> to vector<8x32xf32>
    %236 = vector.shape_cast %233 : vector<8x32xf32> to vector<1x8x32xf32>
    tpu.vector_store %arg12[%c0_119, %c0_120, %c0_121], %236 {strides = array<i32>} : memref<1x8x32xf32, #tpu.memory_space<vmem>>, vector<1x8x32xf32>,
    return
  }
  func.func @transform_0(%arg0: i32) -> (i32, i32, i32) {
    %c0_i32 = arith.constant 0 : i32
    %c0_i32_0 = arith.constant 0 : i32
    %c0_i32_1 = arith.constant 0 : i32
    return %arg0, %c0_i32, %c0_i32_0 : i32, i32, i32
  }
  func.func @transform_1(%arg0: i32) -> (i32, i32) {
    %c0_i32 = arith.constant 0 : i32
    %c0_i32_0 = arith.constant 0 : i32
    %c0_i32_1 = arith.constant 0 : i32
    return %c0_i32, %c0_i32_0 : i32, i32
  }
  func.func @transform_2(%arg0: i32) -> (i32, i32) {
    %c0_i32 = arith.constant 0 : i32
    %c0_i32_0 = arith.constant 0 : i32
    %c0_i32_1 = arith.constant 0 : i32
    return %c0_i32, %c0_i32_0 : i32, i32
  }
  func.func @transform_3(%arg0: i32) -> (i32, i32) {
    %c0_i32 = arith.constant 0 : i32
    %c0_i32_0 = arith.constant 0 : i32
    %c0_i32_1 = arith.constant 0 : i32
    return %c0_i32, %c0_i32_0 : i32, i32
  }
  func.func @transform_4(%arg0: i32) -> (i32, i32) {
    %c0_i32 = arith.constant 0 : i32
    %c0_i32_0 = arith.constant 0 : i32
    %c0_i32_1 = arith.constant 0 : i32
    return %c0_i32, %c0_i32_0 : i32, i32
  }
  func.func @transform_5(%arg0: i32) -> (i32, i32) {
    %c0_i32 = arith.constant 0 : i32
    %c0_i32_0 = arith.constant 0 : i32
    %c0_i32_1 = arith.constant 0 : i32
    return %c0_i32, %c0_i32_0 : i32, i32
  }
  func.func @transform_6(%arg0: i32) -> (i32, i32) {
    %c0_i32 = arith.constant 0 : i32
    %c0_i32_0 = arith.constant 0 : i32
    %c0_i32_1 = arith.constant 0 : i32
    return %c0_i32, %c0_i32_0 : i32, i32
  }
  func.func @transform_7(%arg0: i32) -> (i32, i32) {
    %c0_i32 = arith.constant 0 : i32
    %c0_i32_0 = arith.constant 0 : i32
    %c0_i32_1 = arith.constant 0 : i32
    return %c0_i32, %c0_i32_0 : i32, i32
  }
  func.func @transform_8(%arg0: i32) -> (i32, i32) {
    %c0_i32 = arith.constant 0 : i32
    %c0_i32_0 = arith.constant 0 : i32
    %c0_i32_1 = arith.constant 0 : i32
    return %c0_i32, %c0_i32_0 : i32, i32
  }
  func.func @transform_9(%arg0: i32) -> (i32, i32) {
    %c0_i32 = arith.constant 0 : i32
    %c0_i32_0 = arith.constant 0 : i32
    %c0_i32_1 = arith.constant 0 : i32
    return %c0_i32, %c0_i32_0 : i32, i32
  }
  func.func @transform_10(%arg0: i32) -> (i32, i32) {
    %c0_i32 = arith.constant 0 : i32
    %c0_i32_0 = arith.constant 0 : i32
    %c0_i32_1 = arith.constant 0 : i32
    return %c0_i32, %c0_i32_0 : i32, i32
  }
  func.func @transform_11(%arg0: i32) -> (i32, i32, i32) {
    %c0_i32 = arith.constant 0 : i32
    %c0_i32_0 = arith.constant 0 : i32
    %c0_i32_1 = arith.constant 0 : i32
    return %arg0, %c0_i32, %c0_i32_0 : i32, i32, i32
  }
}

</mosaic_0001>

<bundles_post_ra>
// kernel: tpu_custom_call.1
= control target key start
LH: loop header
LB: loop body
LE: loop exit
PB: predicated region body
PF: predicated region fallthrough
CT: control target
= control target key end

     0   :  { %16 = vsyncpa [#allocation5], 0  ;;  %s3011_s0 = inlined_call_operand.hbm [shape: f32[2,8,32], index: 0, kind: input, shape index: {}]   ;;  %s3012_s1 = inlined_call_operand.vmem [shape: f32[8,4], index: 1, kind: input, shape index: {}]   ;;  %s3013_s2 = inlined_call_operand.vmem [shape: f32[8,4], index: 2, kind: input, shape index: {}]   ;;  %s3014_s3 = inlined_call_operand.vmem [shape: f32[1,32], index: 3, kind: input, shape index: {}]   ;;  %s3015_s4 = inlined_call_operand.vmem [shape: f32[1,32], index: 4, kind: input, shape index: {}]   ;;  %s3016_s5 = inlined_call_operand.vmem [shape: f32[32,96], index: 5, kind: input, shape index: {}]   ;;  %s3017_s6 = inlined_call_operand.vmem [shape: f32[32,32], index: 6, kind: input, shape index: {}]   ;;  %s3018_s7 = inlined_call_operand.vmem [shape: f32[1,32], index: 7, kind: input, shape index: {}]   ;;  %s3019_s8 = inlined_call_operand.vmem [shape: f32[1,32], index: 8, kind: input, shape index: {}]   ;;  %s3020_s9 = inlined_call_operand.vmem [shape: f32[32,128], index: 9, kind: input, shape index: {}]   ;;  %s3021_s10 = inlined_call_operand.vmem [shape: f32[64,32], index: 10, kind: input, shape index: {}]   ;;  %s3022_s11 = inlined_call_operand.hbm [shape: f32[2,8,32], index: 11, kind: output, shape index: {}]  }
   0x1   :  { %18 = vsyncpa [#allocation5 + $0x1], 0 }
   0x2   :  { %19 = vsyncpa [#allocation6], 0 }
   0x3   :  { %21 = vsyncpa [#allocation6 + $0x1], 0  ;;  %s2552_s17 = smov 0   ;;  %s2554_s18 = smov 0  }
   0x4   :  { %s2556_s19 = smov 0   ;;  %s2558_s20 = smov 0  }
   0x5 LB: > { %3029 = sst [smem:[#allocation10_spill]] %s2470_s19  ;;  %s2573_s21 = sadd.s32 4294967295, %s2474_s20   ;;  %s2474_s20 = sphi %s2558_s20, %s3045_s20   ;;  %s2470_s19 = sphi %s2556_s19, %s3047_s19   ;;  %s2466_s18 = sphi %s2554_s18, %s3049_s18   ;;  %s2462_s17 = sphi %s2552_s17, %s3048_s17  }
   0x6   : > { %s2097_s22 = sadd.s32 4294967294, %s2474_s20   ;;  %s2577_s23 = sadd.s32 1, %s2474_s20  }
   0x7   : > { %3030 = sst [smem:[#allocation11_spill]] %s2577_s23  ;;  %s34_s24 = sadd.s32 1, %s2470_s19 }
   0x8   : > { %s31_s25 = ssub.s32 %s2474_s20, %s2577_s23  ;;  %p41_p0 = scmp.ne.s32.totalorder %s2470_s19, %s2466_s18 }
   0x9   : > { %p32_p1 = scmp.eq.s32.totalorder %s31_s25, 0  ;;  %p42_p2 = scmp.eq.s32.totalorder %s2474_s20, 0 }
   0xa   : > { %p47_p3 = scmp.ne.s32.totalorder %s2466_s18, %s2462_s17  ;;  %p48_p4 = scmp.eq.s32.totalorder %s2573_s21, 0 }
   0xb   : > { %s2589_s26 = scalar_select %p32_p1, %s2470_s19, %s34_s24  }
   0xc   : > { %p2591_p5 = por %p42_p2, %p41_p0  ;;  %p2595_p6 = por %p48_p4, %p47_p3 }
   0xd   : > { %3031 = sst [smem:[#allocation12_spill]] %s2589_s26  ;;  %p281_p7 = scmp.eq.s32.totalorder %s2573_s21, 1 }
   0xe   : > { %s3033_s28 = scalar_select %p2595_p6, 1, 0 }
   0xf   : > { %p287_p8 = scmp.eq.s32.totalorder %s2097_s22, 1  ;;  %p2310_p10 = scmp.lt.s32.totalorder %s2474_s20, 2 }
  0x10   : > { %p2602_p11 = por %p281_p7, %p41_p0  ;;  %s337_s12 = sand.u32 1, %s2470_s19  }
  0x11   : > { %p2606_p12 = por %p287_p8, %p47_p3  ;;  %s2101_s13 = sshll.u32 %s2474_s20, 7 }
  0x12   : > { %s3034_s29 = scalar_select %p2602_p11, 1, 0 }
  0x13   : > { %s3035_s30 = scalar_select %p2606_p12, 1, 0 }
  0x14   : > { %s2100_s14 = sshll.u32 %s337_s12, 3  ;;  %s2615_s24 = scalar_lea.hbm %s3011_s0, %s2101_s13 }
  0x15   : > { %3036 = sst [smem:[#allocation13_spill]] %s3035_s30  ;;  %s341_s22 = scalar_lea.vmem [#allocation4], %s2100_s14 }
  0x16   : > { %s348_s25 = sshll.u32 %s341_s22, 4  ;;  %p2619_p13 = pnand %p2310_p10, %p2591_p5  ;;  %s2623_s25 = int_to_ptr.vmem [resolvable:$true] %s348_s25 }
  0x17   : > { %s338_s19 = scalar_lea.sflag [#allocation5], %s337_s12  ;;  %s2382_s23 = scalar_lea.hbm %s2615_s24, 128 }
  0x18   : > { %p2383_p2 = scmp.ne.s32.totalorder %s2615_s24, %s2382_s23  ;;  %p2384_p3 = pneg %p2619_p13 }
  0x19   : > { %s2387_s27 = scalar_lea.hbm %s3011_s0, 256  ;;  %p2388_p5 = scmp.lt.s32.totalorder %s2615_s24, %s3011_s0 }
  0x1a   : > { %p2385_p4 = pnand %p2384_p3, %p2383_p2  ;;  %p2389_p8 = scmp.lt.s32.totalorder %s2387_s27, %s2382_s23 }
  0x1c   : > { %p2386_p7 = pneg %p2385_p4  ;;  %p2390_p10 = por %p2389_p8, %p2388_p5 }
  0x1e   : > { %p2391_p9 = pnand %p2390_p10, %p2386_p7 }
  0x20   : > { %2394 = shalt.err (!%p2391_p9)
}
  0x21   : > { %s2395_s12 = scalar_lea.vmem %s2623_s25, 128  ;;  %s2476_s22 = smov [#allocation4]  }
  0x22   : > { %p2396_p0 = scmp.ne.s32.totalorder %s2623_s25, %s2395_s12  ;;  %s2400_s30 = sshll.u32 %s2476_s22, 4  ;;  %s2401_s30 = int_to_ptr.vmem [resolvable:$false] %s2400_s30 }
  0x23   : > { %s2402_s13 = scalar_lea.vmem %s2401_s30, 256  ;;  %p2403_p4 = scmp.lt.s32.totalorder %s2623_s25, %s2401_s30 }
  0x24   : > { %p2398_p1 = pnand %p2396_p0, %p2384_p3  ;;  %p2404_p12 = scmp.lt.s32.totalorder %s2402_s13, %s2395_s12 }
  0x26   : > { %p2399_p2 = pneg %p2398_p1  ;;  %p2405_p11 = por %p2404_p12, %p2403_p4 }
  0x28   : > { %p2406_p6 = pnand %p2405_p11, %p2399_p2 }
  0x2a   : > { %2409 = shalt.err (!%p2406_p6)
}
  0x2b   : > { %2305 = dma.hbm_to_vmem [thread:$0]  (!%p2619_p13), %s2615_s24, 128, %s2623_s25, %s338_s19  }
  0x2c   : > { %p3038_p9 = scmp.lt.s32.totalorder %s2474_s20, 3  ;;  %p3039_p7 = scmp.ge.s32.totalorder %s2474_s20, 1 }
  0x2e   : > { %p354_p0 = pnand %p3039_p7, %p3038_p9 }
  0x2f   : > { %s2650_s23 = sand.u32 (!%p354_p0), 1, %s2466_s18   ;;  %p3040_p6 = scmp.ne.s32.totalorder (!%p354_p0), %s3033_s28, 0 }
  0x30   : > { %357 = sbr.rel (%p354_p0) target bundleno = 2803 (0xaf3), region = 64  ;;  %s2103_s30 = sshll.u32 (!%p354_p0), %s2650_s23, 3 }
  0x31   : > { %s360_s14 = scalar_lea.sflag (!%p354_p0), [#allocation5], %s2650_s23  ;;  %s363_s26 = scalar_lea.vmem (!%p354_p0), [#allocation4], %s2103_s30 }
  0x35   : > { %2453 = dma.done.wait (%p3040_p6), %s360_s14, 128  }
  0x36   : > { %2455 = vsyncadd (%p3040_p6), %s360_s14, 4294967168  ;;  %vm405_vm0 = vcmask 261120   ;;  %v2660_v0 = vld [vmem:[%s363_s26] sm:$0xff]  ;;  %v437_v7 = vld [vmem:[%s3016_s5 + $0x18] sm:$0xff]  ;;  %v2477_v8 = vmov 0.0   ;;  %vm2478_vm1 = vmmov 0  }
  0x37   : > { %v406_v1 = vsel %vm405_vm0, %v2660_v0, 0.0  ;;  %2186 = vmatprep.subr.mxu1 %v2477_v8  ;;  %v436_v9 = vld [vmem:[%s3016_s5 + $0x10] sm:$0xff]  ;;  %2194 = vmatprep.mubr.msk.f32.mxu1 %vm2478_vm1, %v2477_v8  ;;  %v435_v10 = vld [vmem:[%s3016_s5 + $0x8] sm:$0xff]  ;;  %v434_v11 = vld [vmem:[%s3016_s5] sm:$0xff]  ;;  %vm511_vm2 = vcmask 189440   ;;  %vm527_vm3 = vcmask 191490  }
  0x38   : > { %407 = vadd.xlane.f32.xlu0 %v406_v1  ;;  %2187 = vmatpush3.msra.mxu1 %v437_v7  ;;  %v2105_v16 = vld [vmem:[%s3014_s3] ss:$0 sm:$0xff]  ;;  %vm533_vm4 = vcmask 193540   ;;  %vm539_vm5 = vcmask 195590   ;;  %s2479_s19 = smov 56   ;;  %s2480_s24 = smov 104  }
  0x39   : > { %2207 = vmatprep.subr.mxu0 %v2477_v8  ;;  %2188 = vmatprep.subr.mxu1 %v2477_v8  ;;  %v2106_v18 = vld [vmem:[%s3015_s4] ss:$0 sm:$0xff]  ;;  %s2481_s27 = smov 80   ;;  %s2482_s15 = smov 8   ;;  %vm685_vm6 = vcmask 31744   ;;  %vm1307_vm7 = vcmask 64512  }
  0x3a   : > { %2209 = vmatprep.mubr.msk.f32.mxu0 %vm2478_vm1, %v2477_v8  ;;  %2189 = vmatpush3.msra.mxu1 %v436_v9  ;;  %v2704_v23 = vld [vmem:[%s3012_s1] sm:$0xff]  ;;  %s2483_s16 = smov 12   ;;  %s2484_s13 = smov 4   ;;  %vm1672_vm8 = vcmask 58368   ;;  %vm1678_vm9 = vcmask 126018   ;;  %vm1683_vm10 = vcmask 193668  }
  0x3b   : > { %2190 = vmatprep.subr.mxu1 %v2477_v8  ;;  %v2712_v24 = vld [vmem:[%s3013_s2] sm:$0xff]  ;;  %s2485_s14 = smov 124   ;;  %s2486_s26 = smov 120   ;;  %vm1688_vm11 = vcmask 261318   ;;  %vm1937_vm12 = vcmask 523264  }
  0x3c   : > { %2191 = vmatpush3.msra.mxu1 %v435_v10  ;;  %s2489_s28 = smov 24   ;;  %s2490_s25 = smov 64  }
  0x3d   : > { %2192 = vmatprep.subr.mxu1 %v2477_v8  ;;  %p3041_p12 = scmp.ne.s32.totalorder %s3034_s29, 0 }
  0x3e   : > { %2193 = vmatpush3.msra.mxu1 %v434_v11 }
  0x3f   : > { %2197 = vmatprep.subr.mxu1 %v2477_v8 }
  0xc1   : > { %v408_v2 = vpop.xlane.xlu0 %407 }
  0xc2   : > { %v410_v3 = vmul.f32 0.03125, %v408_v2 }
  0xc4   : > { %v411_v4 = vsub.f32 %v2660_v0, %v410_v3 }
  0xc6   : > { %v412_v5 = vmul.f32 %v411_v4, %v411_v4 }
  0xc8   : > { %v413_v6 = vsel %vm405_vm0, %v412_v5, 0.0 }
  0xc9   : > { %414 = vadd.xlane.f32.xlu0 %v413_v6 }
 0x152   : > { %v415_v12 = vpop.xlane.xlu0 %414 }
 0x153   : > { %v416_v13 = vmul.f32 0.03125, %v415_v12 }
 0x155   : > { %v417_v14 = vadd.f32 1e-05, %v416_v13 }
 0x157   : > { %2358 = vrsqrt.f32 %v417_v14 }
 0x164   : > { %v2359_v15 = vpop.eup %2358 }
 0x165   : > { %v419_v17 = vmul.f32 %v2359_v15, %v411_v4 }
 0x167   : > { %v426_v19 = vmul.f32 %v2105_v16, %v419_v17 }
 0x169   : > { %v433_v20 = vadd.f32 %v2106_v18, %v426_v19 }
 0x16b   : > { %2195 = vmatmul.mubr.msk.f32.vlgmr.msra.gmra.mxu1 %vm405_vm0, %v433_v20 }
 0x16c   : > { %2199 = vmatprep.mubr.msk.f32.mxu1 %vm2478_vm1, %v2477_v8 }
 0x22b   : > { %v507_v21 = vpop.f32.mrf.mxu1 }
 0x22c   : > { %522 = vrot.lane.b32.xlu0 %v507_v21, %s2479_s19  ;;  %514 = vrot.lane.b32.xlu1 %v507_v21, %s2480_s24  ;;  %512 = vst.msk [vmem:[#allocation2] sm:$0x3] %vm511_vm2, %v507_v21  ;;  %s2487_s19 = smov 112   ;;  %s2488_s24 = smov 16  }
 0x22d   : > { %528 = vst.msk [vmem:[#allocation2 + $0x6] sm:$0xc] %vm527_vm3, %v507_v21  ;;  %v2196_v22 = vpop.f32.mrf.mxu1 }
 0x22e   : > { %534 = vst.msk [vmem:[#allocation2 + $0xc] sm:$0x30] %vm533_vm4, %v507_v21 }
 0x22f   : > { %540 = vst.msk [vmem:[#allocation2 + $0x12] sm:$0xc0] %vm539_vm5, %v507_v21 }
 0x230   : > { %518 = vrot.lane.b32.xlu1 %v507_v21, %s2481_s27  ;;  %614 = vrot.lane.b32.xlu0 %v2704_v23, %s2482_s15  ;;  %s2135_s27 = sshll.u32 %s2573_s21, 7  ;;  %s2491_s21 = smov [#allocation7]  }
 0x234   : > { %655 = vrot.lane.b32.xlu1 %v2704_v23, %s2483_s16 }
 0x238   : > { %621 = vrot.lane.b32.xlu1 %v2712_v24, %s2483_s16  ;;  %s401_s16 = scalar_lea.vmem [#allocation7], %s2103_s30  ;;  %s2414_s30 = sshll.u32 %s2491_s21, 4  ;;  %s2415_s30 = int_to_ptr.vmem [resolvable:$false] %s2414_s30 }
 0x239   : > { %s2027_s12 = sshll.u32 %s401_s16, 4  ;;  %s2028_s12 = int_to_ptr.vmem [resolvable:$true] %s2027_s12 }
 0x23a   : > { %p2417_p3 = scmp.lt.s32.totalorder %s2028_s12, %s2415_s30 }
 0x23c   : > { %648 = vrot.lane.b32.xlu1 %v2712_v24, %s2482_s15 }
 0x240   : > { %587 = vrot.lane.b32.xlu1 %v2704_v23, %s2484_s13 }
 0x244   : > { %555 = vrot.lane.b32.xlu1 %v2712_v24, %s2484_s13 }
 0x29e   : > { %v523_v25 = vpop.permute.xlu0 %522  ;;  %v515_v26 = vpop.permute.xlu1 %514 }
 0x29f   : > { %525 = vst.msk [vmem:[#allocation2 + $0x6] sm:$0x3] %vm511_vm2, %v523_v25  ;;  %517 = vst.msk [vmem:[#allocation2 + $0x2] sm:$0x3] %vm511_vm2, %v515_v26 }
 0x2a0   : > { %531 = vst.msk [vmem:[#allocation2 + $0xc] sm:$0xc] %vm527_vm3, %v523_v25  ;;  %529 = vst.msk [vmem:[#allocation2 + $0x8] sm:$0xc] %vm527_vm3, %v515_v26 }
 0x2a1   : > { %537 = vst.msk [vmem:[#allocation2 + $0x12] sm:$0x30] %vm533_vm4, %v523_v25  ;;  %535 = vst.msk [vmem:[#allocation2 + $0xe] sm:$0x30] %vm533_vm4, %v515_v26 }
 0x2a2   : > { %543 = vst.msk [vmem:[#allocation2 + $0x18] sm:$0xc0] %vm539_vm5, %v523_v25  ;;  %541 = vst.msk [vmem:[#allocation2 + $0x14] sm:$0xc0] %vm539_vm5, %v515_v26  ;;  %v519_v27 = vpop.permute.xlu1 %518  ;;  %v615_v51 = vpop.permute.xlu0 %614 }
 0x2a3   : > { %521 = vst.msk [vmem:[#allocation2 + $0x4] sm:$0x3] %vm511_vm2, %v519_v27 }
 0x2a4   : > { %530 = vst.msk [vmem:[#allocation2 + $0xa] sm:$0xc] %vm527_vm3, %v519_v27 }
 0x2a5   : > { %536 = vst.msk [vmem:[#allocation2 + $0x10] sm:$0x30] %vm533_vm4, %v519_v27 }
 0x2a6   : > { %542 = vst.msk [vmem:[#allocation2 + $0x16] sm:$0xc0] %vm539_vm5, %v519_v27  ;;  %v656_v28 = vpop.permute.xlu1 %655 }
 0x2aa   : > { %v622_v29 = vpop.permute.xlu1 %621  ;;  %v2733_v31 = vld [vmem:[#allocation2] sm:$0xff] }
 0x2ab   : > { %v658_v33 = vmul.f32 %v656_v28, %v2733_v31  ;;  %v2737_v34 = vld [vmem:[#allocation2 + $0x8] sm:$0xff]  ;;  %v624_v43 = vmul.f32 %v622_v29, %v2733_v31  ;;  %v617_v3 = vmul.f32 %v615_v51, %v2733_v31  ;;  %v582_v21 = vmul.f32 %v2712_v24, %v2733_v31 }
 0x2ac   : > { %v2731_v30 = vld [vmem:[#allocation2 + $0x10] sm:$0xff]  ;;  %v625_v36 = vmul.f32 %v622_v29, %v2737_v34  ;;  %v659_v37 = vmul.f32 %v656_v28, %v2737_v34  ;;  %v618_v2 = vmul.f32 %v615_v51, %v2737_v34  ;;  %v583_v26 = vmul.f32 %v2712_v24, %v2737_v34 }
 0x2ad   : > { %v660_v32 = vmul.f32 %v656_v28, %v2731_v30  ;;  %666 = vrot.lane.b32.xlu1 %v658_v33, %s2485_s14  ;;  %v2743_v38 = vld [vmem:[#allocation2 + $0x18] sm:$0xff]  ;;  %v626_v40 = vmul.f32 %v622_v29, %v2731_v30  ;;  %v619_v9 = vmul.f32 %v615_v51, %v2731_v30 }
 0x2ae   : > { %v649_v35 = vpop.permute.xlu1 %648  ;;  %v661_v41 = vmul.f32 %v656_v28, %v2743_v38  ;;  %v627_v45 = vmul.f32 %v622_v29, %v2743_v38  ;;  %v620_v10 = vmul.f32 %v615_v51, %v2743_v38  ;;  %v585_v33 = vmul.f32 %v2712_v24, %v2743_v38 }
 0x2af   : > { %670 = vrot.lane.b32.xlu0 %v660_v32, %s2485_s14  ;;  %v651_v52 = vmul.f32 %v649_v35, %v2733_v31  ;;  %v652_v56 = vmul.f32 %v649_v35, %v2737_v34  ;;  %v653_v59 = vmul.f32 %v649_v35, %v2731_v30  ;;  %v654_v60 = vmul.f32 %v649_v35, %v2743_v38 }
 0x2b0   : > { %v584_v32 = vmul.f32 %v2712_v24, %v2731_v30  ;;  %v550_v24 = vmul.f32 %v2704_v23, %v2733_v31 }
 0x2b1   : > { %668 = vrot.lane.b32.xlu1 %v659_v37, %s2485_s14 }
 0x2b2   : > { %v588_v39 = vpop.permute.xlu1 %587 }
 0x2b3   : > { %634 = vrot.lane.b32.xlu0 %v625_v36, %s2485_s14  ;;  %v592_v42 = vmul.f32 %v588_v39, %v2731_v30  ;;  %v590_v47 = vmul.f32 %v588_v39, %v2733_v31  ;;  %v591_v48 = vmul.f32 %v588_v39, %v2737_v34  ;;  %v593_v49 = vmul.f32 %v588_v39, %v2743_v38 }
 0x2b5   : > { %672 = vrot.lane.b32.xlu1 %v661_v41, %s2485_s14 }
 0x2b6   : > { %v556_v44 = vpop.permute.xlu1 %555 }
 0x2b7   : > { %636 = vrot.lane.b32.xlu0 %v626_v40, %s2485_s14  ;;  %v558_v46 = vmul.f32 %v556_v44, %v2733_v31  ;;  %v559_v50 = vmul.f32 %v556_v44, %v2737_v34  ;;  %v561_v14 = vmul.f32 %v556_v44, %v2743_v38  ;;  %v560_v15 = vmul.f32 %v556_v44, %v2731_v30 }
 0x2b8   : > { %v551_v40 = vmul.f32 %v2704_v23, %v2737_v34 }
 0x2b9   : > { %632 = vrot.lane.b32.xlu1 %v624_v43, %s2485_s14 }
 0x2bb   : > { %602 = vrot.lane.b32.xlu0 %v592_v42, %s2485_s14 }
 0x2bd   : > { %638 = vrot.lane.b32.xlu1 %v627_v45, %s2485_s14 }
 0x2bf   : > { %566 = vrot.lane.b32.xlu0 %v558_v46, %s2485_s14 }
 0x2c1   : > { %598 = vrot.lane.b32.xlu1 %v590_v47, %s2485_s14  ;;  %v553_v47 = vmul.f32 %v2704_v23, %v2743_v38 }
 0x2c5   : > { %600 = vrot.lane.b32.xlu1 %v591_v48, %s2485_s14  ;;  %v552_v48 = vmul.f32 %v2704_v23, %v2731_v30 }
 0x2c9   : > { %604 = vrot.lane.b32.xlu1 %v593_v49, %s2485_s14 }
 0x2cd   : > { %568 = vrot.lane.b32.xlu1 %v559_v50, %s2485_s14 }
 0x31f   : > { %v667_v53 = vpop.permute.xlu1 %666 }
 0x320   : > { %v678_v54 = vadd.f32 %v667_v53, %v651_v52 }
 0x321   : > { %v671_v55 = vpop.permute.xlu0 %670 }
 0x322   : > { %683 = vrot.lane.b32.xlu0 %v678_v54, %s2486_s26  ;;  %v680_v63 = vadd.f32 %v671_v55, %v653_v59 }
 0x323   : > { %v669_v57 = vpop.permute.xlu1 %668 }
 0x324   : > { %v679_v58 = vadd.f32 %v669_v57, %v652_v56 }
 0x325   : > { %v635_v61 = vpop.permute.xlu0 %634 }
 0x326   : > { %762 = vrot.lane.b32.xlu0 %v679_v58, %s2486_s26  ;;  %v645_v5 = vsub.f32 %v618_v2, %v635_v61 }
 0x327   : > { %v673_v62 = vpop.permute.xlu1 %672 }
 0x328   : > { %v681_v1 = vadd.f32 %v673_v62, %v654_v60 }
 0x329   : > { %v637_v7 = vpop.permute.xlu0 %636 }
 0x32a   : > { %918 = vrot.lane.b32.xlu1 %v681_v1, %s2486_s26  ;;  %840 = vrot.lane.b32.xlu0 %v680_v63, %s2486_s26  ;;  %v646_v12 = vsub.f32 %v619_v9, %v637_v7 }
 0x32b   : > { %v633_v4 = vpop.permute.xlu1 %632 }
 0x32c   : > { %v644_v6 = vsub.f32 %v617_v3, %v633_v4 }
 0x32d   : > { %v603_v17 = vpop.permute.xlu0 %602 }
 0x32e   : > { %1074 = vrot.lane.b32.xlu1 %v645_v5, %s2486_s26  ;;  %996 = vrot.lane.b32.xlu0 %v644_v6, %s2486_s26  ;;  %v612_v37 = vadd.f32 %v603_v17, %v584_v32 }
 0x32f   : > { %v639_v11 = vpop.permute.xlu1 %638 }
 0x330   : > { %v647_v13 = vsub.f32 %v620_v10, %v639_v11 }
 0x331   : > { %v567_v19 = vpop.permute.xlu0 %566 }
 0x332   : > { %1230 = vrot.lane.b32.xlu1 %v647_v13, %s2486_s26  ;;  %1152 = vrot.lane.b32.xlu0 %v646_v12, %s2486_s26  ;;  %v578_v43 = vsub.f32 %v550_v24, %v567_v19  ;;  %s2014_s26 = scalar_lea.sflag [#allocation6], %s2650_s23 }
 0x333   : > { %v599_v16 = vpop.permute.xlu1 %598 }
 0x334   : > { %v610_v25 = vadd.f32 %v599_v16, %v582_v21 }
 0x336   : > { %572 = vrot.lane.b32.xlu1 %v561_v14, %s2485_s14  ;;  %570 = vrot.lane.b32.xlu0 %v560_v15, %s2485_s14  ;;  %s2973_s14 = scalar_lea.hbm %s3022_s11, %s2135_s27 }
 0x337   : > { %v601_v18 = vpop.permute.xlu1 %600 }
 0x338   : > { %v611_v29 = vadd.f32 %v601_v18, %v583_v26 }
 0x33b   : > { %v605_v20 = vpop.permute.xlu1 %604 }
 0x33c   : > { %v613_v39 = vadd.f32 %v605_v20, %v585_v33 }
 0x33f   : > { %v569_v27 = vpop.permute.xlu1 %568 }
 0x340   : > { %v579_v44 = vsub.f32 %v551_v40, %v569_v27 }
 0x394   : > { %v684_v22 = vpop.permute.xlu0 %683 }
 0x395   : > { %2198 = vmatpush3.xpose.msk.msra.mxu1 %vm685_vm6, %v684_v22 }
 0x396   : > { %2202 = vmatprep.subr.mxu1 %v2477_v8 }
 0x398   : > { %2200 = vmatmul.mubr.msk.f32.vlgmr.msra.gmra.mxu1 %vm685_vm6, %v610_v25  ;;  %v763_v28 = vpop.permute.xlu0 %762 }
 0x399   : > { %2203 = vmatpush3.xpose.msk.msra.mxu1 %vm685_vm6, %v763_v28  ;;  %2204 = vmatprep.mubr.msk.f32.mxu1 %vm2478_vm1, %v2477_v8 }
 0x39a   : > { %2212 = vmatprep.subr.mxu1 %v2477_v8 }
 0x39c   : > { %v919_v35 = vpop.permute.xlu1 %918  ;;  %2205 = vmatmul.mubr.msk.f32.vlgmr.msra.gmra.mxu1 %vm685_vm6, %v611_v29  ;;  %v841_v36 = vpop.permute.xlu0 %840 }
 0x39d   : > { %2208 = vmatpush3.xpose.msk.msra.mxu0 %vm685_vm6, %v841_v36  ;;  %2213 = vmatpush3.xpose.msk.msra.mxu1 %vm685_vm6, %v919_v35 }
 0x39e   : > { %2214 = vmatprep.mubr.msk.f32.mxu1 %vm2478_vm1, %v2477_v8  ;;  %2217 = vmatprep.subr.mxu0 %v2477_v8 }
 0x39f   : > { %2222 = vmatprep.subr.mxu1 %v2477_v8 }
 0x3a0   : > { %v1075_v41 = vpop.permute.xlu1 %1074  ;;  %2210 = vmatmul.mubr.msk.f32.vlgmr.msra.gmra.mxu0 %vm685_vm6, %v612_v37  ;;  %2215 = vmatmul.mubr.msk.f32.vlgmr.msra.gmra.mxu1 %vm685_vm6, %v613_v39  ;;  %v997_v42 = vpop.permute.xlu0 %996 }
 0x3a1   : > { %2218 = vmatpush3.xpose.msk.msra.mxu0 %vm685_vm6, %v997_v42  ;;  %2223 = vmatpush3.xpose.msk.msra.mxu1 %vm685_vm6, %v1075_v41 }
 0x3a2   : > { %2219 = vmatprep.mubr.msk.f32.mxu0 %vm2478_vm1, %v2477_v8  ;;  %2224 = vmatprep.mubr.msk.f32.mxu1 %vm2478_vm1, %v2477_v8 }
 0x3a3   : > { %2227 = vmatprep.subr.mxu0 %v2477_v8  ;;  %2232 = vmatprep.subr.mxu1 %v2477_v8 }
 0x3a4   : > { %v1231_v45 = vpop.permute.xlu1 %1230  ;;  %2225 = vmatmul.mubr.msk.f32.vlgmr.msra.gmra.mxu1 %vm685_vm6, %v579_v44  ;;  %v1153_v46 = vpop.permute.xlu0 %1152  ;;  %2220 = vmatmul.mubr.msk.f32.vlgmr.msra.gmra.mxu0 %vm685_vm6, %v578_v43 }
 0x3a5   : > { %2228 = vmatpush3.xpose.msk.msra.mxu0 %vm685_vm6, %v1153_v46  ;;  %2233 = vmatpush3.xpose.msk.msra.mxu1 %vm685_vm6, %v1231_v45 }
 0x3a6   : > { %2229 = vmatprep.mubr.msk.f32.mxu0 %vm2478_vm1, %v2477_v8  ;;  %2234 = vmatprep.mubr.msk.f32.mxu1 %vm2478_vm1, %v2477_v8 }
 0x3a7   : > { %2237 = vmatprep.subr.mxu0 %v2477_v8  ;;  %2242 = vmatprep.subr.mxu1 %v2477_v8 }
 0x3a8   : > { %v573_v49 = vpop.permute.xlu1 %572  ;;  %v571_v50 = vpop.permute.xlu0 %570 }
 0x3a9   : > { %v581_v51 = vsub.f32 %v553_v47, %v573_v49  ;;  %v580_v52 = vsub.f32 %v552_v48, %v571_v50 }
 0x3ab   : > { %2230 = vmatmul.mubr.msk.f32.vlgmr.msra.gmra.mxu0 %vm685_vm6, %v580_v52  ;;  %2235 = vmatmul.mubr.msk.f32.vlgmr.msra.gmra.mxu1 %vm685_vm6, %v581_v51 }
 0x3ac   : > { %2239 = vmatprep.mubr.msk.f32.mxu0 %vm2478_vm1, %v2477_v8  ;;  %2244 = vmatprep.mubr.msk.f32.mxu1 %vm2478_vm1, %v2477_v8 }
 0x458   : > { %v757_v53 = vpop.f32.mrf.mxu1 }
 0x45a   : > { %v2201_v23 = vpop.f32.mrf.mxu1 }
 0x45c   : > { %v835_v54 = vpop.f32.mrf.mxu1 }
 0x45e   : > { %v2206_v55 = vpop.f32.mrf.mxu1 }
 0x460   : > { %v913_v56 = vpop.f32.mrf.mxu0  ;;  %v991_v57 = vpop.f32.mrf.mxu1 }
 0x462   : > { %v2211_v58 = vpop.f32.mrf.mxu0  ;;  %v2216_v59 = vpop.f32.mrf.mxu1 }
 0x464   : > { %v1069_v60 = vpop.f32.mrf.mxu0  ;;  %v1147_v61 = vpop.f32.mrf.mxu1 }
 0x465   : > { %v1070_v62 = vadd.f32 %v1069_v60, %v757_v53  ;;  %v1148_v63 = vadd.f32 %v1147_v61, %v835_v54 }
 0x466   : > { %v2221_v1 = vpop.f32.mrf.mxu0  ;;  %v2226_v2 = vpop.f32.mrf.mxu1 }
 0x467   : > { %v1308_v3 = vsel %vm1307_vm7, %v1070_v62, -inf  ;;  %v1311_v4 = vsel %vm1307_vm7, %v1148_v63, -inf }
 0x468   : > { %1309 = vmax.xlane.f32.xlu0 %v1308_v3  ;;  %1312 = vmax.xlane.f32.xlu1 %v1311_v4 }
 0x46b   : > { %v1225_v5 = vpop.f32.mrf.mxu0  ;;  %v1303_v6 = vpop.f32.mrf.mxu1 }
 0x46c   : > { %v1226_v7 = vadd.f32 %v1225_v5, %v913_v56  ;;  %v1304_v11 = vadd.f32 %v1303_v6, %v991_v57  ;;  %v1736_v5 = vld [vmem:[%s3017_s6 + $0x18] sm:$0xff]  ;;  %v1735_v6 = vld [vmem:[%s3017_s6 + $0x10] sm:$0xff] }
 0x46d   : > { %v2231_v9 = vpop.f32.mrf.mxu0  ;;  %v2236_v10 = vpop.f32.mrf.mxu1 }
 0x46e   : > { %v1314_v12 = vsel %vm1307_vm7, %v1226_v7, -inf  ;;  %v1317_v13 = vsel %vm1307_vm7, %v1304_v11, -inf  ;;  %v1734_v9 = vld [vmem:[%s3017_s6 + $0x8] sm:$0xff] }
 0x46f   : > { %1315 = vmax.xlane.f32.xlu0 %v1314_v12 }
 0x473   : > { %1318 = vmax.xlane.f32.xlu0 %v1317_v13 }
 0x479   : > { %1365 = vrot.lane.b32.xlu1 %v2733_v31, %s2487_s19 }
 0x4f1   : > { %v1310_v14 = vpop.xlane.xlu0 %1309  ;;  %v1313_v15 = vpop.xlane.xlu1 %1312 }
 0x4f2   : > { %v1320_v16 = vsub.f32 %v1070_v62, %v1310_v14  ;;  %v1321_v17 = vsub.f32 %v1148_v63, %v1313_v15 }
 0x4f4   : > { %v1324_v18 = vmul.f32 1.442695, %v1320_v16  ;;  %v1326_v19 = vmul.f32 1.442695, %v1321_v17 }
 0x4f5   : > { %v1366_v20 = vpop.permute.xlu1 %1365 }
 0x4f6   : > { %2360 = vpow2.f32 %v1324_v18  ;;  %2238 = vmatpush3.msra.mxu0 %v1366_v20 }
 0x4f7   : > { %2362 = vpow2.f32 %v1326_v19  ;;  %2247 = vmatprep.subr.mxu0 %v2477_v8 }
 0x4f8   : > { %v1316_v21 = vpop.xlane.xlu0 %1315 }
 0x4f9   : > { %v1322_v22 = vsub.f32 %v1226_v7, %v1316_v21 }
 0x4fb   : > { %v1328_v25 = vmul.f32 1.442695, %v1322_v22 }
 0x4fc   : > { %v1319_v26 = vpop.xlane.xlu0 %1318 }
 0x4fd   : > { %2364 = vpow2.f32 %v1328_v25  ;;  %v1323_v27 = vsub.f32 %v1304_v11, %v1319_v26  ;;  %v1733_v11 = vld [vmem:[%s3017_s6] sm:$0xff] }
 0x4ff   : > { %v1330_v28 = vmul.f32 1.442695, %v1323_v27 }
 0x501   : > { %2366 = vpow2.f32 %v1330_v28 }
 0x503   : > { %v2361_v31 = vpop.eup %2360 }
 0x504   : > { %v2363_v29 = vpop.eup %2362  ;;  %v1332_v32 = vsel %vm1307_vm7, %v2361_v31, 0.0 }
 0x505   : > { %1333 = vadd.xlane.f32.xlu1 %v1332_v32  ;;  %v1335_v33 = vsel %vm1307_vm7, %v2363_v29, 0.0 }
 0x506   : > { %1336 = vadd.xlane.f32.xlu0 %v1335_v33 }
 0x50a   : > { %v2365_v35 = vpop.eup %2364 }
 0x50b   : > { %v1338_v36 = vsel %vm1307_vm7, %v2365_v35, 0.0 }
 0x50c   : > { %1339 = vadd.xlane.f32.xlu1 %v1338_v36 }
 0x50e   : > { %v2367_v37 = vpop.eup %2366 }
 0x50f   : > { %v1341_v39 = vsel %vm1307_vm7, %v2367_v37, 0.0 }
 0x510   : > { %1342 = vadd.xlane.f32.xlu0 %v1341_v39  ;;  %v1843_v39 = vld [vmem:[%s3020_s9 + $0x18] sm:$0xff] }
 0x51d   : > { %1519 = vrot.lane.b32.xlu1 %v2731_v30, %s2487_s19 }
 0x521   : > { %1596 = vrot.lane.b32.xlu1 %v2743_v38, %s2487_s19 }
 0x526   : > { %1442 = vrot.lane.b32.xlu0 %v2737_v34, %s2487_s19  ;;  %s2416_s19 = scalar_lea.vmem %s2415_s30, 256 }
 0x58e   : > { %v1334_v24 = vpop.xlane.xlu1 %1333 }
 0x58f   : > { %2368 = vrcp.f32 %v1334_v24  ;;  %v1337_v40 = vpop.xlane.xlu0 %1336 }
 0x590   : > { %2370 = vrcp.f32 %v1337_v40 }
 0x595   : > { %v1340_v41 = vpop.xlane.xlu1 %1339 }
 0x596   : > { %2372 = vrcp.f32 %v1340_v41 }
 0x599   : > { %v1343_v42 = vpop.xlane.xlu0 %1342  ;;  %v1520_v48 = vpop.permute.xlu1 %1519 }
 0x59a   : > { %2374 = vrcp.f32 %v1343_v42 }
 0x59c   : > { %v2369_v43 = vpop.eup %2368 }
 0x59d   : > { %v2371_v44 = vpop.eup %2370  ;;  %v1348_v45 = vmul.f32 %v2369_v43, %v1334_v24  ;;  %v1443_v46 = vpop.permute.xlu0 %1442  ;;  %v1841_v24 = vld [vmem:[%s3020_s9 + $0x8] sm:$0xff] }
 0x59e   : > { %v1349_v47 = vmul.f32 %v2371_v44, %v1337_v40  ;;  %2243 = vmatpush3.msra.mxu1 %v1443_v46  ;;  %v1597_v54 = vpop.permute.xlu1 %1596  ;;  %v1840_v40 = vld [vmem:[%s3020_s9] sm:$0xff] }
 0x59f   : > { %v1352_v30 = vsub.f32 2.0, %v1348_v45  ;;  %2252 = vmatprep.subr.mxu1 %v2477_v8  ;;  %v2129_v45 = vld [vmem:[%s3018_s7] ss:$0 sm:$0xff] }
 0x5a0   : > { %v1353_v38 = vsub.f32 2.0, %v1349_v47  ;;  %v2130_v47 = vld [vmem:[%s3019_s8] ss:$0 sm:$0xff] }
 0x5a1   : > { %v1356_v34 = vmul.f32 %v2369_v43, %v1352_v30 }
 0x5a2   : > { %v1357_v49 = vmul.f32 %v2371_v44, %v1353_v38 }
 0x5a3   : > { %v2373_v50 = vpop.eup %2372  ;;  %v1360_v51 = vmul.f32 %v2361_v31, %v1356_v34  ;;  %v1935_v34 = vld [vmem:[%s3021_s10 + $0x30] sm:$0xff] }
 0x5a4   : > { %v1361_v52 = vmul.f32 %v2363_v29, %v1357_v49  ;;  %v1350_v53 = vmul.f32 %v2373_v50, %v1340_v41  ;;  %v1934_v49 = vld [vmem:[%s3021_s10 + $0x28] sm:$0xff] }
 0x5a5   : > { %2240 = vmatmul.mubr.msk.f32.vlgmr.msra.gmra.mxu0 %vm1307_vm7, %v1360_v51  ;;  %v1932_v51 = vld [vmem:[%s3021_s10 + $0x18] sm:$0xff] }
 0x5a6   : > { %v1354_v23 = vsub.f32 2.0, %v1350_v53  ;;  %2245 = vmatmul.mubr.msk.f32.vlgmr.msra.gmra.mxu1 %vm1307_vm7, %v1361_v52  ;;  %2248 = vmatpush3.msra.mxu0 %v1520_v48  ;;  %v1936_v48 = vld [vmem:[%s3021_s10 + $0x38] sm:$0xff]  ;;  %v1931_v52 = vld [vmem:[%s3021_s10 + $0x10] sm:$0xff]  ;;  %v1930_v53 = vld [vmem:[%s3021_s10 + $0x8] sm:$0xff] }
 0x5a7   : > { %v2375_v55 = vpop.eup %2374  ;;  %2253 = vmatpush3.msra.mxu1 %v1597_v54  ;;  %2249 = vmatprep.mubr.msk.f32.mxu0 %vm2478_vm1, %v2477_v8 }
 0x5a8   : > { %v1358_v56 = vmul.f32 %v2373_v50, %v1354_v23  ;;  %v1351_v57 = vmul.f32 %v2375_v55, %v1343_v42  ;;  %2254 = vmatprep.mubr.msk.f32.mxu1 %vm2478_vm1, %v2477_v8  ;;  %2257 = vmatprep.subr.mxu0 %v2477_v8  ;;  %v1933_v50 = vld [vmem:[%s3021_s10 + $0x20] sm:$0xff] }
 0x5a9   : > { %2268 = vmatprep.subr.mxu1 %v2477_v8  ;;  %v1929_v23 = vld [vmem:[%s3021_s10] sm:$0xff] }
 0x5aa   : > { %v1362_v58 = vmul.f32 %v2365_v35, %v1358_v56  ;;  %v1355_v59 = vsub.f32 2.0, %v1351_v57 }
 0x5ac   : > { %v1359_v60 = vmul.f32 %v2375_v55, %v1355_v59  ;;  %2250 = vmatmul.mubr.msk.f32.vlgmr.msra.gmra.mxu0 %vm1307_vm7, %v1362_v58 }
 0x5ad   : > { %2265 = vmatprep.mubr.msk.f32.mxu0 %vm2478_vm1, %v2477_v8  ;;  %2258 = vmatpush3.msra.mxu0 %v1736_v5 }
 0x5ae   : > { %v1363_v61 = vmul.f32 %v2367_v37, %v1359_v60  ;;  %2259 = vmatprep.subr.mxu0 %v2477_v8 }
 0x5af   : > { %2260 = vmatpush3.msra.mxu0 %v1735_v6 }
 0x5b0   : > { %2255 = vmatmul.mubr.msk.f32.vlgmr.msra.gmra.mxu1 %vm1307_vm7, %v1363_v61  ;;  %2261 = vmatprep.subr.mxu0 %v2477_v8 }
 0x5b1   : > { %2276 = vmatprep.mubr.msk.f32.mxu1 %vm2478_vm1, %v2477_v8  ;;  %2262 = vmatpush3.msra.mxu0 %v1734_v9 }
 0x5b2   : > { %2263 = vmatprep.subr.mxu0 %v2477_v8  ;;  %2269 = vmatpush3.msra.mxu1 %v1843_v39 }
 0x5b3   : > { %2264 = vmatpush3.msra.mxu0 %v1733_v11  ;;  %2270 = vmatprep.subr.mxu1 %v2477_v8 }
 0x5b4   : > { %2279 = vmatprep.subr.mxu0 %v2477_v8 }
 0x665   : > { %v1437_v62 = vpop.f32.mrf.mxu0 }
 0x666   : > { %1673 = vst.msk [vmem:[#allocation3] sm:$0x3] %vm1672_vm8, %v1437_v62  ;;  %v1514_v63 = vpop.f32.mrf.mxu1  ;;  %1675 = vrot.lane.b32.xlu0 %v1437_v62, %s2482_s15 }
 0x667   : > { %1690 = vst.msk [vmem:[#allocation3 + $0x2] sm:$0x3] %vm1672_vm8, %v1514_v63  ;;  %1692 = vrot.lane.b32.xlu1 %v1514_v63, %s2482_s15  ;;  %v2241_v1 = vpop.f32.mrf.mxu0 }
 0x668   : > { %v2246_v2 = vpop.f32.mrf.mxu1 }
 0x66a   : > { %1680 = vrot.lane.b32.xlu0 %v1437_v62, %s2488_s24 }
 0x66b   : > { %1696 = vrot.lane.b32.xlu1 %v1514_v63, %s2488_s24 }
 0x66c   : > { %v1591_v3 = vpop.f32.mrf.mxu0 }
 0x66d   : > { %1704 = vst.msk [vmem:[#allocation3 + $0x4] sm:$0x3] %vm1672_vm8, %v1591_v3 }
 0x66e   : > { %v2251_v4 = vpop.f32.mrf.mxu0  ;;  %1685 = vrot.lane.b32.xlu0 %v1437_v62, %s2489_s28 }
 0x66f   : > { %1700 = vrot.lane.b32.xlu1 %v1514_v63, %s2489_s28 }
 0x670   : > { %v1668_v7 = vpop.f32.mrf.mxu1 }
 0x671   : > { %1718 = vst.msk [vmem:[#allocation3 + $0x6] sm:$0x3] %vm1672_vm8, %v1668_v7 }
 0x672   : > { %1706 = vrot.lane.b32.xlu0 %v1591_v3, %s2482_s15  ;;  %v2256_v10 = vpop.f32.mrf.mxu1 }
 0x673   : > { %1720 = vrot.lane.b32.xlu1 %v1668_v7, %s2482_s15  ;;  %s2410_s15 = scalar_lea.vmem %s2028_s12, 128 }
 0x674   : > { %p2411_p11 = scmp.ne.s32.totalorder %s2028_s12, %s2410_s15  ;;  %p2418_p5 = scmp.lt.s32.totalorder %s2416_s19, %s2410_s15 }
 0x676   : > { %1710 = vrot.lane.b32.xlu0 %v1591_v3, %s2488_s24  ;;  %p2412_p13 = pnand %p2411_p11, %p3041_p12  ;;  %p2419_p8 = por %p2418_p5, %p2417_p3 }
 0x677   : > { %1724 = vrot.lane.b32.xlu1 %v1668_v7, %s2488_s24 }
 0x678   : > { %p2413_p1 = pneg %p2412_p13 }
 0x67a   : > { %1714 = vrot.lane.b32.xlu0 %v1591_v3, %s2489_s28  ;;  %p2420_p10 = pnand %p2419_p8, %p2413_p1 }
 0x67b   : > { %1728 = vrot.lane.b32.xlu1 %v1668_v7, %s2489_s28 }
 0x6d8   : > { %v1676_v12 = vpop.permute.xlu0 %1675 }
 0x6d9   : > { %1679 = vst.msk [vmem:[#allocation3 - $0x2] sm:$0xc] %vm1678_vm9, %v1676_v12  ;;  %v1693_v13 = vpop.permute.xlu1 %1692 }
 0x6da   : > { %1695 = vst.msk [vmem:[#allocation3] sm:$0xc] %vm1678_vm9, %v1693_v13 }
 0x6dc   : > { %v1681_v14 = vpop.permute.xlu0 %1680 }
 0x6dd   : > { %1684 = vst.msk [vmem:[#allocation3 - $0x4] sm:$0x30] %vm1683_vm10, %v1681_v14  ;;  %v1697_v15 = vpop.permute.xlu1 %1696 }
 0x6de   : > { %1699 = vst.msk [vmem:[#allocation3 - $0x2] sm:$0x30] %vm1683_vm10, %v1697_v15 }
 0x6e0   : > { %v1686_v16 = vpop.permute.xlu0 %1685 }
 0x6e1   : > { %1689 = vst.msk [vmem:[#allocation3 - $0x6] sm:$0xc0] %vm1688_vm11, %v1686_v16  ;;  %v1701_v17 = vpop.permute.xlu1 %1700 }
 0x6e2   : > { %1703 = vst.msk [vmem:[#allocation3 - $0x4] sm:$0xc0] %vm1688_vm11, %v1701_v17 }
 0x6e4   : > { %v1707_v18 = vpop.permute.xlu0 %1706 }
 0x6e5   : > { %1709 = vst.msk [vmem:[#allocation3 + $0x2] sm:$0xc] %vm1678_vm9, %v1707_v18  ;;  %v1721_v19 = vpop.permute.xlu1 %1720 }
 0x6e6   : > { %1723 = vst.msk [vmem:[#allocation3 + $0x4] sm:$0xc] %vm1678_vm9, %v1721_v19 }
 0x6e8   : > { %v1711_v20 = vpop.permute.xlu0 %1710 }
 0x6e9   : > { %1713 = vst.msk [vmem:[#allocation3] sm:$0x30] %vm1683_vm10, %v1711_v20  ;;  %v1725_v21 = vpop.permute.xlu1 %1724 }
 0x6ea   : > { %1727 = vst.msk [vmem:[#allocation3 + $0x2] sm:$0x30] %vm1683_vm10, %v1725_v21 }
 0x6ec   : > { %v1715_v22 = vpop.permute.xlu0 %1714 }
 0x6ed   : > { %1717 = vst.msk [vmem:[#allocation3 - $0x2] sm:$0xc0] %vm1688_vm11, %v1715_v22  ;;  %v1729_v25 = vpop.permute.xlu1 %1728 }
 0x6ee   : > { %1731 = vst.msk [vmem:[#allocation3] sm:$0xc0] %vm1688_vm11, %v1729_v25 }
 0x6f5   : > { %v1732_v26 = vld [vmem:[#allocation3] sm:$0xff] }
 0x6f6   : > { %2266 = vmatmul.mubr.msk.f32.vlgmr.msra.gmra.mxu0 %vm405_vm0, %v1732_v26 }
 0x6f7   : > { %2295 = vmatprep.mubr.msk.f32.mxu0 %vm2478_vm1, %v2477_v8  ;;  %2280 = vmatpush3.msra.mxu0 %v1936_v48 }
 0x6f8   : > { %2281 = vmatprep.subr.mxu0 %v2477_v8 }
 0x6f9   : > { %2282 = vmatpush3.msra.mxu0 %v1935_v34 }
 0x6fa   : > { %2283 = vmatprep.subr.mxu0 %v2477_v8 }
 0x6fb   : > { %2284 = vmatpush3.msra.mxu0 %v1934_v49 }
 0x6fc   : > { %2285 = vmatprep.subr.mxu0 %v2477_v8 }
 0x6fd   : > { %2286 = vmatpush3.msra.mxu0 %v1933_v50 }
 0x6fe   : > { %2287 = vmatprep.subr.mxu0 %v2477_v8 }
 0x6ff   : > { %2288 = vmatpush3.msra.mxu0 %v1932_v51 }
 0x700   : > { %2289 = vmatprep.subr.mxu0 %v2477_v8 }
 0x701   : > { %2290 = vmatpush3.msra.mxu0 %v1931_v52 }
 0x702   : > { %2291 = vmatprep.subr.mxu0 %v2477_v8 }
 0x703   : > { %2292 = vmatpush3.msra.mxu0 %v1930_v53 }
 0x704   : > { %2293 = vmatprep.subr.mxu0 %v2477_v8 }
 0x705   : > { %2294 = vmatpush3.msra.mxu0 %v1929_v23 }
 0x7b6   : > { %v1806_v27 = vpop.f32.mrf.mxu0 }
 0x7b7   : > { %v2907_v28 = vadd.f32 %v1806_v27, %v2660_v0  ;;  %v1842_v0 = vld [vmem:[%s3020_s9 + $0x10] sm:$0xff] }
 0x7b8   : > { %v2267_v31 = vpop.f32.mrf.mxu0  ;;  %2271 = vmatpush3.msra.mxu1 %v1842_v0 }
 0x7b9   : > { %v1813_v29 = vsel %vm405_vm0, %v2907_v28, 0.0  ;;  %2272 = vmatprep.subr.mxu1 %v2477_v8 }
 0x7ba   : > { %1814 = vadd.xlane.f32.xlu0 %v1813_v29  ;;  %2273 = vmatpush3.msra.mxu1 %v1841_v24 }
 0x7bb   : > { %2274 = vmatprep.subr.mxu1 %v2477_v8 }
 0x7bc   : > { %2275 = vmatpush3.msra.mxu1 %v1840_v40 }
 0x843   : > { %v1815_v32 = vpop.xlane.xlu0 %1814 }
 0x844   : > { %v1816_v33 = vmul.f32 0.03125, %v1815_v32 }
 0x846   : > { %v1817_v35 = vsub.f32 %v2907_v28, %v1816_v33 }
 0x848   : > { %v1818_v36 = vmul.f32 %v1817_v35, %v1817_v35 }
 0x84a   : > { %v1819_v37 = vsel %vm405_vm0, %v1818_v36, 0.0 }
 0x84b   : > { %1820 = vadd.xlane.f32.xlu1 %v1819_v37 }
 0x8d4   : > { %v1821_v41 = vpop.xlane.xlu1 %1820 }
 0x8d5   : > { %v1822_v42 = vmul.f32 0.03125, %v1821_v41 }
 0x8d7   : > { %v1823_v43 = vadd.f32 1e-05, %v1822_v42 }
 0x8d9   : > { %2376 = vrsqrt.f32 %v1823_v43 }
 0x8e6   : > { %v2377_v44 = vpop.eup %2376 }
 0x8e7   : > { %v1825_v46 = vmul.f32 %v2377_v44, %v1817_v35 }
 0x8e9   : > { %v1832_v30 = vmul.f32 %v2129_v45, %v1825_v46 }
 0x8eb   : > { %v1839_v38 = vadd.f32 %v2130_v47, %v1832_v30 }
 0x8ed   : > { %2277 = vmatmul.mubr.msk.f32.vlgmr.msra.gmra.mxu1 %vm405_vm0, %v1839_v38 }
 0x9ad   : > { %v1913_v54 = vpop.f32.mrf.mxu1 }
 0x9ae   : > { %1925 = vrot.lane.b32.xlu0 %v1913_v54, %s2490_s25  ;;  %v2132_v56 = vmul.f32 -1.442695, %v1913_v54 }
 0x9af   : > { %v2278_v55 = vpop.f32.mrf.mxu1 }
 0x9b0   : > { %2378 = vpow2.f32 %v2132_v56 }
 0x9bd   : > { %v2379_v57 = vpop.eup %2378 }
 0x9be   : > { %v1920_v58 = vadd.f32 1.0, %v2379_v57 }
 0x9c0   : > { %2380 = vrcp.f32 %v1920_v58 }
 0x9cd   : > { %v2381_v59 = vpop.eup %2380 }
 0x9ce   : > { %v1923_v60 = vmul.f32 %v2381_v59, %v1913_v54 }
 0xa20   : > { %v1926_v8 = vpop.permute.xlu0 %1925 }
 0xa21   : > { %v1928_v61 = vmul.f32 %v1926_v8, %v1923_v60 }
 0xa23   : > { %2296 = vmatmul.mubr.msk.f32.vlgmr.msra.gmra.mxu0 %vm1937_vm12, %v1928_v61 }
 0xae3   : > { %v2007_v62 = vpop.f32.mrf.mxu0 }
 0xae4   : > { %v2011_v63 = vadd.f32 %v2007_v62, %v2907_v28 }
 0xae5   : > { %v2297_v1 = vpop.f32.mrf.mxu0 }
 0xae6   : > { %2012 = vst.msk [vmem:[%s401_s16] sm:$0xff] %vm405_vm0, %v2011_v63 }
 0xae7   : > { %2423 = shalt.err (!%p2420_p10)
}
 0xae8   : > { %s2424_s24 = scalar_lea.hbm %s2973_s14, 128  ;;  %s2428_s25 = scalar_lea.hbm %s3022_s11, 256 }
 0xae9   : > { %p2425_p2 = scmp.ne.s32.totalorder %s2973_s14, %s2424_s24  ;;  %p2429_p7 = scmp.lt.s32.totalorder %s2973_s14, %s3022_s11 }
 0xaea   : > { %p2430_p0 = scmp.lt.s32.totalorder %s2428_s25, %s2424_s24 }
 0xaeb   : > { %p2426_p4 = pnand %p2425_p2, %p3041_p12 }
 0xaec   : > { %p2431_p6 = por %p2430_p0, %p2429_p7 }
 0xaed   : > { %p2427_p9 = pneg %p2426_p4 }
 0xaef   : > { %p2432_p11 = pnand %p2431_p6, %p2427_p9 }
 0xaf1   : > { %2435 = shalt.err (!%p2432_p11)
}
 0xaf2   : > { %2300 = dma.vmem_to_hbm [thread:$0]  (%p3041_p12), %s2028_s12, 128, %s2973_s14, %s2014_s26  }
 0xaf3 PF: > { %s3042_s22 = sld [smem:[#allocation13_spill]]  ;;  %s2039_s13 = sand.u32 1, %s2462_s17  }
 0xaf4   : > { %p3044_p1 = scmp.ge.s32.totalorder %s2474_s20, 2  ;;  %s2040_s15 = scalar_lea.sflag [#allocation6], %s2039_s13 }
 0xaf9   : > { %p3043_p13 = scmp.ne.s32.totalorder %s3042_s22, 0 }
 0xafb   : > { %p2307_p3 = pnand %p3044_p1, %p3043_p13 }
 0xafd   : > { %p2308_p5 = pneg %p2307_p3 }
 0xaff   : > { %2457 = dma.done.wait (%p2308_p5), %s2040_s15, 128  }
 0xb00   : > { %2459 = vsyncadd (%p2308_p5), %s2040_s15, 4294967168  ;;  %s3045_s20 = sld [smem:[#allocation11_spill]]  ;;  %s3048_s17 = smov %s2466_s18 }
 0xb01   : > { %s3046_s21 = sld [smem:[#allocation10_spill]] }
 0xb02   : > { %s3047_s19 = sld [smem:[#allocation12_spill]] }
 0xb06   : > { %p24_p8 = scmp.ge.s32.totalorder %s3045_s20, 4  }
 0xb07   : > { %s3049_s18 = smov %s3046_s21 }
 0xb08   :  { %26 = sbr.rel (!%p24_p8) target bundleno = 5 (0x5), region = 112 }
 0xb0d   :  { %2045 = vsyncpa [#allocation5], 1 }
 0xb0e   :  { %2047 = vsyncpa [#allocation5 + $0x1], 1 }
 0xb0f   :  { %2048 = vsyncpa [#allocation6], 1 }
 0xb10   :  { %2050 = vsyncpa [#allocation6 + $0x1], 1 }

</bundles_post_ra>
